<compile_context>
chip_gen: v6e
topology: v6e:2x2x1
jax: 0.10.0
libtpu: 0.0.40
codegen_flags: <defaults>
</compile_context>

<pallas_src>
import functools

import jax
import jax.numpy as jnp
from jax import lax
from jax.experimental import pallas as pl
from jax.experimental.pallas import tpu as pltpu


# ----------------------------- Pallas kernel --------------------------------

def lstm_encoder_kernel(x_ref, wih0_ref, whh0_ref, b0_ref,
                        wih1_ref, whh1_ref, b1_ref,
                        out_ref,
                        h0_ref, c0_ref, h1_ref, c1_ref, xp_ref,
                        *, hidden_dim, batch_pad, compute_dtype, unroll):
    H = hidden_dim
    Bp = batch_pad
    rows = x_ref.shape[0]
    tT = rows // Bp                      # time steps in this tile
    f32 = jnp.float32
    cdt = compute_dtype

    # ---- reset recurrent state at the first time tile -----------------------
    @pl.when(pl.program_id(0) == 0)
    def _init():
        h0_ref[...] = jnp.zeros_like(h0_ref)
        c0_ref[...] = jnp.zeros_like(c0_ref)
        h1_ref[...] = jnp.zeros_like(h1_ref)
        c1_ref[...] = jnp.zeros_like(c1_ref)

    # ---- hoisted, time-parallel layer-0 input projection (bias folded in) ---
    xp_ref[...] = (jnp.dot(x_ref[...], wih0_ref[...],
                           preferred_element_type=f32)
                   + b0_ref[...])

    # loop-invariant weights / pre-broadcast bias (hoisted out of recurrence)
    whh0 = whh0_ref[...]
    wih1 = wih1_ref[...]
    whh1 = whh1_ref[...]
    b1 = jnp.broadcast_to(b1_ref[...], (Bp, 4 * H))

    def sig(v):
        # single-EUP sigmoid: sigmoid(x) == 0.5 * tanh(0.5 * x) + 0.5
        return 0.5 * jnp.tanh(0.5 * v) + 0.5

    def step(t, carry):
        del carry
        # sublane-aligned 8-row window of this time step (row = t*Bp + b)
        r = pl.ds(pl.multiple_of(t * Bp, Bp), Bp)

        h0 = h0_ref[...]; c0 = c0_ref[...]
        h1 = h1_ref[...]; c1 = c1_ref[...]

        # ----- layer 0: only h @ Whh0 is on the serial dependency chain ------
        g0 = xp_ref[r, :] + jnp.dot(h0.astype(cdt), whh0,
                                    preferred_element_type=f32)
        i0 = sig(g0[:, 0:H])
        f0 = sig(g0[:, H:2 * H])
        z0 = jnp.tanh(g0[:, 2 * H:3 * H])
        o0 = sig(g0[:, 3 * H:4 * H])
        c0n = f0 * c0 + i0 * z0
        h0n = o0 * jnp.tanh(c0n)

        # ----- layer 1: two K=H matmuls (no in-kernel concat) ----------------
        g1 = (jnp.dot(h0n.astype(cdt), wih1, preferred_element_type=f32)
              + jnp.dot(h1.astype(cdt), whh1, preferred_element_type=f32)
              + b1)
        i1 = sig(g1[:, 0:H])
        f1 = sig(g1[:, H:2 * H])
        z1 = jnp.tanh(g1[:, 2 * H:3 * H])
        o1 = sig(g1[:, 3 * H:4 * H])
        c1n = f1 * c1 + i1 * z1
        h1n = o1 * jnp.tanh(c1n)

        h0_ref[...] = h0n; c0_ref[...] = c0n
        h1_ref[...] = h1n; c1_ref[...] = c1n
        # FC head is hoisted out of the kernel; store h1 (lane-dense slab).
        out_ref[r, :] = h1n.astype(out_ref.dtype)
        return 0

    lax.fori_loop(0, tT, step, 0, unroll=unroll)


# ------------------------------ wrapper --------------------------------------

def _pick_vmem_limit():
    try:
        cap = int(pltpu.get_tpu_info().vmem_capacity_bytes)
    except Exception:
        cap = 64 * 1024 * 1024          # conservative (v7x per-TC) fallback
    return (cap * 3) // 4               # 48 MiB on v7x, ~96 MiB on v5e/v6e


def _pick_time_tile(T, Bp, D, H, requested, vmem_limit):
    """Largest tT <= requested with T % tT == 0 that fits the VMEM budget."""
    weights_bytes = (D * 4 * H + 3 * H * 4 * H + 2 * 4 * H) * 4

    def fits(tt):
        tile_bytes = (2 * tt * Bp * (D + H) * 4     # double-buffered x in / h1 out
                      + tt * Bp * 4 * H * 4         # hoisted x-projection scratch
                      + 4 * Bp * H * 4)             # recurrent state
        return tile_bytes + weights_bytes <= (vmem_limit * 3) // 4

    tt = max(1, min(requested, T))
    while tt > 1 and (T % tt != 0 or not fits(tt)):
        tt -= 1
    return tt                                       # tt=1 always valid


def lstm_encoder_forward(x, params, *, time_tile=64,
                         compute_dtype=jnp.float32):
    """x: (B, T, D) float32, batch_first like the PyTorch module."""
    B, T, D = x.shape
    H = params["whh0"].shape[0]
    Bp = 8                                          # pad batch to one sublane group

    vmem_limit = _pick_vmem_limit()
    tT = _pick_time_tile(T, Bp, D, H, time_tile, vmem_limit)
    nt = T // tT

    # time-major, sublane-padded, batch-flattened 2-D layout: row = t*Bp + b
    x_t = jnp.transpose(x, (1, 0, 2))               # (T, B, D)
    x_t = jnp.pad(x_t, ((0, 0), (0, Bp - B), (0, 0)))
    x_flat = x_t.reshape(T * Bp, D).astype(compute_dtype)

    # pre-cast loop-invariant MXU weights once (no per-tile VPU casts)
    wih0 = params["wih0"].astype(compute_dtype)
    whh0 = params["whh0"].astype(compute_dtype)
    wih1 = params["wih1"].astype(compute_dtype)
    whh1 = params["whh1"].astype(compute_dtype)

    def full_spec(a):
        return pl.BlockSpec(a.shape, lambda t: (0,) * a.ndim)

    kernel = functools.partial(
        lstm_encoder_kernel,
        hidden_dim=H, batch_pad=Bp, compute_dtype=compute_dtype,
        unroll=(True if tT <= 16 else 8))

    h1_flat = pl.pallas_call(
        kernel,
        out_shape=jax.ShapeDtypeStruct((T * Bp, H), jnp.float32),
        grid=(nt,),
        in_specs=[
            pl.BlockSpec((tT * Bp, D), lambda t: (t, 0)),      # x tile
            full_spec(wih0), full_spec(whh0), full_spec(params["b0"]),
            full_spec(wih1), full_spec(whh1), full_spec(params["b1"]),
        ],
        out_specs=pl.BlockSpec((tT * Bp, H), lambda t: (t, 0)),
        scratch_shapes=[
            pltpu.VMEM((Bp, H), jnp.float32),                  # h0
            pltpu.VMEM((Bp, H), jnp.float32),                  # c0
            pltpu.VMEM((Bp, H), jnp.float32),                  # h1
            pltpu.VMEM((Bp, H), jnp.float32),                  # c1
            pltpu.VMEM((tT * Bp, 4 * H), jnp.float32),         # hoisted x-proj
        ],
        compiler_params=pltpu.CompilerParams(
            dimension_semantics=("arbitrary",),
            vmem_limit_bytes=vmem_limit,
        ),
    )(x_flat, wih0, whh0, params["b0"], wih1, whh1, params["b1"])

    # FC head outside the serial kernel: time-parallel, megacore-friendly.
    h1_seq = h1_flat.reshape(T, Bp, H)[:, :B, :]               # drop pad rows
    out = jnp.einsum("tbh,ho->tbo", h1_seq, params["wfc"],
                     preferred_element_type=jnp.float32) + params["bfc"]
    return jnp.transpose(out, (1, 0, 2))                       # (B, T, O)


# ------------------------- params (deterministic) -----------------------------

def init_params(key, input_dim, hidden_dim, output_dim):
    H = hidden_dim
    bound = 1.0 / float(H) ** 0.5
    ks = jax.random.split(key, 12)

    def u(k_, shape):
        return jax.random.uniform(k_, shape, jnp.float32, -bound, bound)

    return {
        # layer 0: PyTorch weight_ih_l0 (4H, D) -> transposed (D, 4H), etc.
        "wih0": u(ks[0], (input_dim, 4 * H)),
        "whh0": u(ks[1], (H, 4 * H)),
        "b0":   u(ks[2], (1, 4 * H)) + u(ks[3], (1, 4 * H)),   # b_ih + b_hh
        # layer 1 input dim == H
        "wih1": u(ks[4], (H, 4 * H)),
        "whh1": u(ks[5], (H, 4 * H)),
        "b1":   u(ks[6], (1, 4 * H)) + u(ks[7], (1, 4 * H)),
        # fc: PyTorch weight (O, H) -> transposed (H, O)
        "wfc":  u(ks[8], (H, output_dim)),
        "bfc":  u(ks[9], (1, output_dim)),
    }


# --------------------------- pure-JAX reference -------------------------------

def reference_forward(x, params, H):
    B, T, _ = x.shape

    def cell(x_t, h, c, wih, whh, b):
        gates = x_t @ wih + h @ whh + b
        i = jax.nn.sigmoid(gates[:, 0:H])
        f = jax.nn.sigmoid(gates[:, H:2 * H])
        g = jnp.tanh(gates[:, 2 * H:3 * H])
        o = jax.nn.sigmoid(gates[:, 3 * H:4 * H])
        c = f * c + i * g
        return o * jnp.tanh(c), c

    h0 = c0 = h1 = c1 = jnp.zeros((B, H), jnp.float32)
    outs = []
    for t in range(T):
        h0, c0 = cell(x[:, t], h0, c0, params["wih0"], params["whh0"], params["b0"])
        h1, c1 = cell(h0, h1, c1, params["wih1"], params["whh1"], params["b1"])
        outs.append(h1 @ params["wfc"] + params["bfc"])
    return jnp.stack(outs, axis=1)            # (B, T, O)


# --------------------------------- main ---------------------------------------

if __name__ == "__main__":
    B, T = 2, 8
    input_dim, hidden_dim, output_dim = 28, 32, 64   # small version of (28, 256, 512)

    key = jax.random.PRNGKey(0)
    kx, kp = jax.random.split(key)
    x = jax.random.normal(kx, (B, T, input_dim), jnp.float32)
    params = init_params(kp, input_dim, hidden_dim, output_dim)

    fwd = jax.jit(lambda xx, pp: lstm_encoder_forward(xx, pp))
    out = jax.block_until_ready(fwd(x, params))

    ref = reference_forward(x, params, hidden_dim)
    assert out.shape == (B, T, output_dim), out.shape
    err = float(jnp.max(jnp.abs(out - ref)))
    assert jnp.allclose(out, ref, atol=1e-4, rtol=1e-4), err

    print("KERNEL_OK")
</pallas_src>

<mosaic_0001>
module attributes {stable_mosaic.version = 11 : i64} {
  func.func @lstm_encoder_kernel(%arg0: i32, %arg1: memref<64x28xf32, #tpu.memory_space<vmem>>, %arg2: memref<28x128xf32, #tpu.memory_space<vmem>>, %arg3: memref<32x128xf32, #tpu.memory_space<vmem>>, %arg4: memref<1x128xf32, #tpu.memory_space<vmem>>, %arg5: memref<32x128xf32, #tpu.memory_space<vmem>>, %arg6: memref<32x128xf32, #tpu.memory_space<vmem>>, %arg7: memref<1x128xf32, #tpu.memory_space<vmem>>, %arg8: memref<64x32xf32, #tpu.memory_space<vmem>>, %arg9: memref<8x32xf32, #tpu.memory_space<vmem>>, %arg10: memref<8x32xf32, #tpu.memory_space<vmem>>, %arg11: memref<8x32xf32, #tpu.memory_space<vmem>>, %arg12: memref<8x32xf32, #tpu.memory_space<vmem>>, %arg13: memref<64x128xf32, #tpu.memory_space<vmem>>) attributes {dimension_semantics = [#tpu.dimension_semantics<arbitrary>], iteration_bounds = array<i64: 1>, scalar_prefetch = 0 : i64, scratch_operands = 5 : i64, tpu.core_type = #tpu.core_type<tc>, window_params = [{transform_indices = @transform_0, window_bounds = array<i64: 64, 28>}, {pipeline_mode = #tpu.pipeline_mode<synchronous>, transform_indices = @transform_1, window_bounds = array<i64: 28, 128>}, {pipeline_mode = #tpu.pipeline_mode<synchronous>, transform_indices = @transform_2, window_bounds = array<i64: 32, 128>}, {pipeline_mode = #tpu.pipeline_mode<synchronous>, transform_indices = @transform_3, window_bounds = array<i64: 1, 128>}, {pipeline_mode = #tpu.pipeline_mode<synchronous>, transform_indices = @transform_4, window_bounds = array<i64: 32, 128>}, {pipeline_mode = #tpu.pipeline_mode<synchronous>, transform_indices = @transform_5, window_bounds = array<i64: 32, 128>}, {pipeline_mode = #tpu.pipeline_mode<synchronous>, transform_indices = @transform_6, window_bounds = array<i64: 1, 128>}, {transform_indices = @transform_7, window_bounds = array<i64: 64, 32>}]} {
    %c0_i32 = arith.constant 0 : i32
    %0 = arith.cmpi eq, %arg0, %c0_i32 : i32
    %1 = arith.extui %0 : i1 to i32
    %c0_i32_0 = arith.constant 0 : i32
    %2 = arith.cmpi ne, %1, %c0_i32_0 : i32
    scf.if %2 {
      %cst_337 = arith.constant 0.000000e+00 : f32
      %672 = vector.broadcast %cst_337 : f32 to vector<8x32xf32>
      %c0_338 = arith.constant 0 : index
      %c0_339 = arith.constant 0 : index
      %673 = vector.load %arg9[%c0_338, %c0_339] : memref<8x32xf32, #tpu.memory_space<vmem>>, vector<8x32xf32>
      tpu.vector_store %arg9[%c0_338, %c0_339], %672 {strides = array<i32>} : memref<8x32xf32, #tpu.memory_space<vmem>>, vector<8x32xf32>,
      %cst_340 = arith.constant 0.000000e+00 : f32
      %674 = vector.broadcast %cst_340 : f32 to vector<8x32xf32>
      %c0_341 = arith.constant 0 : index
      %c0_342 = arith.constant 0 : index
      %675 = vector.load %arg10[%c0_341, %c0_342] : memref<8x32xf32, #tpu.memory_space<vmem>>, vector<8x32xf32>
      tpu.vector_store %arg10[%c0_341, %c0_342], %674 {strides = array<i32>} : memref<8x32xf32, #tpu.memory_space<vmem>>, vector<8x32xf32>,
      %cst_343 = arith.constant 0.000000e+00 : f32
      %676 = vector.broadcast %cst_343 : f32 to vector<8x32xf32>
      %c0_344 = arith.constant 0 : index
      %c0_345 = arith.constant 0 : index
      %677 = vector.load %arg11[%c0_344, %c0_345] : memref<8x32xf32, #tpu.memory_space<vmem>>, vector<8x32xf32>
      tpu.vector_store %arg11[%c0_344, %c0_345], %676 {strides = array<i32>} : memref<8x32xf32, #tpu.memory_space<vmem>>, vector<8x32xf32>,
      %cst_346 = arith.constant 0.000000e+00 : f32
      %678 = vector.broadcast %cst_346 : f32 to vector<8x32xf32>
      %c0_347 = arith.constant 0 : index
      %c0_348 = arith.constant 0 : index
      %679 = vector.load %arg12[%c0_347, %c0_348] : memref<8x32xf32, #tpu.memory_space<vmem>>, vector<8x32xf32>
      tpu.vector_store %arg12[%c0_347, %c0_348], %678 {strides = array<i32>} : memref<8x32xf32, #tpu.memory_space<vmem>>, vector<8x32xf32>,
    } else {
    }
    %c0 = arith.constant 0 : index
    %c0_1 = arith.constant 0 : index
    %3 = vector.load %arg1[%c0, %c0_1] : memref<64x28xf32, #tpu.memory_space<vmem>>, vector<64x28xf32>
    %c0_2 = arith.constant 0 : index
    %c0_3 = arith.constant 0 : index
    %4 = vector.load %arg2[%c0_2, %c0_3] : memref<28x128xf32, #tpu.memory_space<vmem>>, vector<28x128xf32>
    %cst = arith.constant dense<0.000000e+00> : vector<64x128xf32>
    %5 = tpu.matmul %3, %4, %cst {dimension_numbers = #tpu.dot_dimension_numbers<[1], [0], [0], [1], [0, 0, 1, 1], [], []>} : vector<64x28xf32>, vector<28x128xf32>, vector<64x128xf32> -> vector<64x128xf32>
    %c0_4 = arith.constant 0 : index
    %c0_5 = arith.constant 0 : index
    %6 = vector.load %arg4[%c0_4, %c0_5] : memref<1x128xf32, #tpu.memory_space<vmem>>, vector<1x128xf32>
    %7 = vector.broadcast %6 : vector<1x128xf32> to vector<64x128xf32>
    %8 = arith.addf %5, %7 : vector<64x128xf32>
    %c0_6 = arith.constant 0 : index
    %c0_7 = arith.constant 0 : index
    %9 = vector.load %arg13[%c0_6, %c0_7] : memref<64x128xf32, #tpu.memory_space<vmem>>, vector<64x128xf32>
    tpu.vector_store %arg13[%c0_6, %c0_7], %8 {strides = array<i32>} : memref<64x128xf32, #tpu.memory_space<vmem>>, vector<64x128xf32>,
    %c0_8 = arith.constant 0 : index
    %c0_9 = arith.constant 0 : index
    %10 = vector.load %arg3[%c0_8, %c0_9] : memref<32x128xf32, #tpu.memory_space<vmem>>, vector<32x128xf32>
    %c0_10 = arith.constant 0 : index
    %c0_11 = arith.constant 0 : index
    %11 = vector.load %arg5[%c0_10, %c0_11] : memref<32x128xf32, #tpu.memory_space<vmem>>, vector<32x128xf32>
    %c0_12 = arith.constant 0 : index
    %c0_13 = arith.constant 0 : index
    %12 = vector.load %arg6[%c0_12, %c0_13] : memref<32x128xf32, #tpu.memory_space<vmem>>, vector<32x128xf32>
    %c0_14 = arith.constant 0 : index
    %c0_15 = arith.constant 0 : index
    %13 = vector.load %arg7[%c0_14, %c0_15] : memref<1x128xf32, #tpu.memory_space<vmem>>, vector<1x128xf32>
    %14 = vector.shape_cast %13 : vector<1x128xf32> to vector<1x128xf32>
    %15 = vector.broadcast %14 : vector<1x128xf32> to vector<8x128xf32>
    %c0_i32_16 = arith.constant 0 : i32
    %c8_i32 = arith.constant 8 : i32
    %16 = arith.muli %c0_i32_16, %c8_i32 : i32
    %17 = tpu.assume_multiple %16, 8 : i32
    %c0_17 = arith.constant 0 : index
    %c0_18 = arith.constant 0 : index
    %18 = vector.load %arg9[%c0_17, %c0_18] : memref<8x32xf32, #tpu.memory_space<vmem>>, vector<8x32xf32>
    %c0_19 = arith.constant 0 : index
    %c0_20 = arith.constant 0 : index
    %19 = vector.load %arg10[%c0_19, %c0_20] : memref<8x32xf32, #tpu.memory_space<vmem>>, vector<8x32xf32>
    %c0_21 = arith.constant 0 : index
    %c0_22 = arith.constant 0 : index
    %20 = vector.load %arg11[%c0_21, %c0_22] : memref<8x32xf32, #tpu.memory_space<vmem>>, vector<8x32xf32>
    %c0_23 = arith.constant 0 : index
    %c0_24 = arith.constant 0 : index
    %21 = vector.load %arg12[%c0_23, %c0_24] : memref<8x32xf32, #tpu.memory_space<vmem>>, vector<8x32xf32>
    %22 = arith.index_cast %17 : i32 to index
    %c0_25 = arith.constant 0 : index
    %23 = vector.load %arg13[%22, %c0_25] : memref<64x128xf32, #tpu.memory_space<vmem>>, vector<8x128xf32>
    %cst_26 = arith.constant dense<0.000000e+00> : vector<8x128xf32>
    %24 = tpu.matmul %18, %10, %cst_26 {dimension_numbers = #tpu.dot_dimension_numbers<[1], [0], [0], [1], [0, 0, 1, 1], [], []>} : vector<8x32xf32>, vector<32x128xf32>, vector<8x128xf32> -> vector<8x128xf32>
    %25 = arith.addf %23, %24 : vector<8x128xf32>
    %26 = vector.extract_strided_slice %25 {offsets = [0, 0], sizes = [8, 32], strides = [1, 1]} : vector<8x128xf32> to vector<8x32xf32>
    %cst_27 = arith.constant 5.000000e-01 : f32
    %27 = vector.broadcast %cst_27 : f32 to vector<8x32xf32>
    %28 = arith.mulf %27, %26 : vector<8x32xf32>
    %29 = math.tanh %28 : vector<8x32xf32>
    %cst_28 = arith.constant 5.000000e-01 : f32
    %30 = vector.broadcast %cst_28 : f32 to vector<8x32xf32>
    %31 = arith.mulf %30, %29 : vector<8x32xf32>
    %cst_29 = arith.constant 5.000000e-01 : f32
    %32 = vector.broadcast %cst_29 : f32 to vector<8x32xf32>
    %33 = arith.addf %31, %32 : vector<8x32xf32>
    %34 = vector.extract_strided_slice %25 {offsets = [0, 32], sizes = [8, 32], strides = [1, 1]} : vector<8x128xf32> to vector<8x32xf32>
    %cst_30 = arith.constant 5.000000e-01 : f32
    %35 = vector.broadcast %cst_30 : f32 to vector<8x32xf32>
    %36 = arith.mulf %35, %34 : vector<8x32xf32>
    %37 = math.tanh %36 : vector<8x32xf32>
    %cst_31 = arith.constant 5.000000e-01 : f32
    %38 = vector.broadcast %cst_31 : f32 to vector<8x32xf32>
    %39 = arith.mulf %38, %37 : vector<8x32xf32>
    %cst_32 = arith.constant 5.000000e-01 : f32
    %40 = vector.broadcast %cst_32 : f32 to vector<8x32xf32>
    %41 = arith.addf %39, %40 : vector<8x32xf32>
    %42 = vector.extract_strided_slice %25 {offsets = [0, 64], sizes = [8, 32], strides = [1, 1]} : vector<8x128xf32> to vector<8x32xf32>
    %43 = math.tanh %42 : vector<8x32xf32>
    %44 = vector.extract_strided_slice %25 {offsets = [0, 96], sizes = [8, 32], strides = [1, 1]} : vector<8x128xf32> to vector<8x32xf32>
    %cst_33 = arith.constant 5.000000e-01 : f32
    %45 = vector.broadcast %cst_33 : f32 to vector<8x32xf32>
    %46 = arith.mulf %45, %44 : vector<8x32xf32>
    %47 = math.tanh %46 : vector<8x32xf32>
    %cst_34 = arith.constant 5.000000e-01 : f32
    %48 = vector.broadcast %cst_34 : f32 to vector<8x32xf32>
    %49 = arith.mulf %48, %47 : vector<8x32xf32>
    %cst_35 = arith.constant 5.000000e-01 : f32
    %50 = vector.broadcast %cst_35 : f32 to vector<8x32xf32>
    %51 = arith.addf %49, %50 : vector<8x32xf32>
    %52 = arith.mulf %41, %19 : vector<8x32xf32>
    %53 = arith.mulf %33, %43 : vector<8x32xf32>
    %54 = arith.addf %52, %53 : vector<8x32xf32>
    %55 = math.tanh %54 : vector<8x32xf32>
    %56 = arith.mulf %51, %55 : vector<8x32xf32>
    %cst_36 = arith.constant dense<0.000000e+00> : vector<8x128xf32>
    %57 = tpu.matmul %56, %11, %cst_36 {dimension_numbers = #tpu.dot_dimension_numbers<[1], [0], [0], [1], [0, 0, 1, 1], [], []>} : vector<8x32xf32>, vector<32x128xf32>, vector<8x128xf32> -> vector<8x128xf32>
    %cst_37 = arith.constant dense<0.000000e+00> : vector<8x128xf32>
    %58 = tpu.matmul %20, %12, %cst_37 {dimension_numbers = #tpu.dot_dimension_numbers<[1], [0], [0], [1], [0, 0, 1, 1], [], []>} : vector<8x32xf32>, vector<32x128xf32>, vector<8x128xf32> -> vector<8x128xf32>
    %59 = arith.addf %57, %58 : vector<8x128xf32>
    %60 = arith.addf %59, %15 : vector<8x128xf32>
    %61 = vector.extract_strided_slice %60 {offsets = [0, 0], sizes = [8, 32], strides = [1, 1]} : vector<8x128xf32> to vector<8x32xf32>
    %cst_38 = arith.constant 5.000000e-01 : f32
    %62 = vector.broadcast %cst_38 : f32 to vector<8x32xf32>
    %63 = arith.mulf %62, %61 : vector<8x32xf32>
    %64 = math.tanh %63 : vector<8x32xf32>
    %cst_39 = arith.constant 5.000000e-01 : f32
    %65 = vector.broadcast %cst_39 : f32 to vector<8x32xf32>
    %66 = arith.mulf %65, %64 : vector<8x32xf32>
    %cst_40 = arith.constant 5.000000e-01 : f32
    %67 = vector.broadcast %cst_40 : f32 to vector<8x32xf32>
    %68 = arith.addf %66, %67 : vector<8x32xf32>
    %69 = vector.extract_strided_slice %60 {offsets = [0, 32], sizes = [8, 32], strides = [1, 1]} : vector<8x128xf32> to vector<8x32xf32>
    %cst_41 = arith.constant 5.000000e-01 : f32
    %70 = vector.broadcast %cst_41 : f32 to vector<8x32xf32>
    %71 = arith.mulf %70, %69 : vector<8x32xf32>
    %72 = math.tanh %71 : vector<8x32xf32>
    %cst_42 = arith.constant 5.000000e-01 : f32
    %73 = vector.broadcast %cst_42 : f32 to vector<8x32xf32>
    %74 = arith.mulf %73, %72 : vector<8x32xf32>
    %cst_43 = arith.constant 5.000000e-01 : f32
    %75 = vector.broadcast %cst_43 : f32 to vector<8x32xf32>
    %76 = arith.addf %74, %75 : vector<8x32xf32>
    %77 = vector.extract_strided_slice %60 {offsets = [0, 64], sizes = [8, 32], strides = [1, 1]} : vector<8x128xf32> to vector<8x32xf32>
    %78 = math.tanh %77 : vector<8x32xf32>
    %79 = vector.extract_strided_slice %60 {offsets = [0, 96], sizes = [8, 32], strides = [1, 1]} : vector<8x128xf32> to vector<8x32xf32>
    %cst_44 = arith.constant 5.000000e-01 : f32
    %80 = vector.broadcast %cst_44 : f32 to vector<8x32xf32>
    %81 = arith.mulf %80, %79 : vector<8x32xf32>
    %82 = math.tanh %81 : vector<8x32xf32>
    %cst_45 = arith.constant 5.000000e-01 : f32
    %83 = vector.broadcast %cst_45 : f32 to vector<8x32xf32>
    %84 = arith.mulf %83, %82 : vector<8x32xf32>
    %cst_46 = arith.constant 5.000000e-01 : f32
    %85 = vector.broadcast %cst_46 : f32 to vector<8x32xf32>
    %86 = arith.addf %84, %85 : vector<8x32xf32>
    %87 = arith.mulf %76, %21 : vector<8x32xf32>
    %88 = arith.mulf %68, %78 : vector<8x32xf32>
    %89 = arith.addf %87, %88 : vector<8x32xf32>
    %90 = math.tanh %89 : vector<8x32xf32>
    %91 = arith.mulf %86, %90 : vector<8x32xf32>
    %c0_47 = arith.constant 0 : index
    %c0_48 = arith.constant 0 : index
    %92 = vector.load %arg9[%c0_47, %c0_48] : memref<8x32xf32, #tpu.memory_space<vmem>>, vector<8x32xf32>
    tpu.vector_store %arg9[%c0_47, %c0_48], %56 {strides = array<i32>} : memref<8x32xf32, #tpu.memory_space<vmem>>, vector<8x32xf32>,
    %c0_49 = arith.constant 0 : index
    %c0_50 = arith.constant 0 : index
    %93 = vector.load %arg10[%c0_49, %c0_50] : memref<8x32xf32, #tpu.memory_space<vmem>>, vector<8x32xf32>
    tpu.vector_store %arg10[%c0_49, %c0_50], %54 {strides = array<i32>} : memref<8x32xf32, #tpu.memory_space<vmem>>, vector<8x32xf32>,
    %c0_51 = arith.constant 0 : index
    %c0_52 = arith.constant 0 : index
    %94 = vector.load %arg11[%c0_51, %c0_52] : memref<8x32xf32, #tpu.memory_space<vmem>>, vector<8x32xf32>
    tpu.vector_store %arg11[%c0_51, %c0_52], %91 {strides = array<i32>} : memref<8x32xf32, #tpu.memory_space<vmem>>, vector<8x32xf32>,
    %c0_53 = arith.constant 0 : index
    %c0_54 = arith.constant 0 : index
    %95 = vector.load %arg12[%c0_53, %c0_54] : memref<8x32xf32, #tpu.memory_space<vmem>>, vector<8x32xf32>
    tpu.vector_store %arg12[%c0_53, %c0_54], %89 {strides = array<i32>} : memref<8x32xf32, #tpu.memory_space<vmem>>, vector<8x32xf32>,
    %96 = arith.index_cast %17 : i32 to index
    %c0_55 = arith.constant 0 : index
    %97 = vector.load %arg8[%96, %c0_55] : memref<64x32xf32, #tpu.memory_space<vmem>>, vector<8x32xf32>
    tpu.vector_store %arg8[%96, %c0_55], %91 {strides = array<i32>} : memref<64x32xf32, #tpu.memory_space<vmem>>, vector<8x32xf32>,
    %c1_i32 = arith.constant 1 : i32
    %c8_i32_56 = arith.constant 8 : i32
    %98 = arith.muli %c1_i32, %c8_i32_56 : i32
    %99 = tpu.assume_multiple %98, 8 : i32
    %c0_57 = arith.constant 0 : index
    %c0_58 = arith.constant 0 : index
    %100 = vector.load %arg9[%c0_57, %c0_58] : memref<8x32xf32, #tpu.memory_space<vmem>>, vector<8x32xf32>
    %c0_59 = arith.constant 0 : index
    %c0_60 = arith.constant 0 : index
    %101 = vector.load %arg10[%c0_59, %c0_60] : memref<8x32xf32, #tpu.memory_space<vmem>>, vector<8x32xf32>
    %c0_61 = arith.constant 0 : index
    %c0_62 = arith.constant 0 : index
    %102 = vector.load %arg11[%c0_61, %c0_62] : memref<8x32xf32, #tpu.memory_space<vmem>>, vector<8x32xf32>
    %c0_63 = arith.constant 0 : index
    %c0_64 = arith.constant 0 : index
    %103 = vector.load %arg12[%c0_63, %c0_64] : memref<8x32xf32, #tpu.memory_space<vmem>>, vector<8x32xf32>
    %104 = arith.index_cast %99 : i32 to index
    %c0_65 = arith.constant 0 : index
    %105 = vector.load %arg13[%104, %c0_65] : memref<64x128xf32, #tpu.memory_space<vmem>>, vector<8x128xf32>
    %cst_66 = arith.constant dense<0.000000e+00> : vector<8x128xf32>
    %106 = tpu.matmul %100, %10, %cst_66 {dimension_numbers = #tpu.dot_dimension_numbers<[1], [0], [0], [1], [0, 0, 1, 1], [], []>} : vector<8x32xf32>, vector<32x128xf32>, vector<8x128xf32> -> vector<8x128xf32>
    %107 = arith.addf %105, %106 : vector<8x128xf32>
    %108 = vector.extract_strided_slice %107 {offsets = [0, 0], sizes = [8, 32], strides = [1, 1]} : vector<8x128xf32> to vector<8x32xf32>
    %cst_67 = arith.constant 5.000000e-01 : f32
    %109 = vector.broadcast %cst_67 : f32 to vector<8x32xf32>
    %110 = arith.mulf %109, %108 : vector<8x32xf32>
    %111 = math.tanh %110 : vector<8x32xf32>
    %cst_68 = arith.constant 5.000000e-01 : f32
    %112 = vector.broadcast %cst_68 : f32 to vector<8x32xf32>
    %113 = arith.mulf %112, %111 : vector<8x32xf32>
    %cst_69 = arith.constant 5.000000e-01 : f32
    %114 = vector.broadcast %cst_69 : f32 to vector<8x32xf32>
    %115 = arith.addf %113, %114 : vector<8x32xf32>
    %116 = vector.extract_strided_slice %107 {offsets = [0, 32], sizes = [8, 32], strides = [1, 1]} : vector<8x128xf32> to vector<8x32xf32>
    %cst_70 = arith.constant 5.000000e-01 : f32
    %117 = vector.broadcast %cst_70 : f32 to vector<8x32xf32>
    %118 = arith.mulf %117, %116 : vector<8x32xf32>
    %119 = math.tanh %118 : vector<8x32xf32>
    %cst_71 = arith.constant 5.000000e-01 : f32
    %120 = vector.broadcast %cst_71 : f32 to vector<8x32xf32>
    %121 = arith.mulf %120, %119 : vector<8x32xf32>
    %cst_72 = arith.constant 5.000000e-01 : f32
    %122 = vector.broadcast %cst_72 : f32 to vector<8x32xf32>
    %123 = arith.addf %121, %122 : vector<8x32xf32>
    %124 = vector.extract_strided_slice %107 {offsets = [0, 64], sizes = [8, 32], strides = [1, 1]} : vector<8x128xf32> to vector<8x32xf32>
    %125 = math.tanh %124 : vector<8x32xf32>
    %126 = vector.extract_strided_slice %107 {offsets = [0, 96], sizes = [8, 32], strides = [1, 1]} : vector<8x128xf32> to vector<8x32xf32>
    %cst_73 = arith.constant 5.000000e-01 : f32
    %127 = vector.broadcast %cst_73 : f32 to vector<8x32xf32>
    %128 = arith.mulf %127, %126 : vector<8x32xf32>
    %129 = math.tanh %128 : vector<8x32xf32>
    %cst_74 = arith.constant 5.000000e-01 : f32
    %130 = vector.broadcast %cst_74 : f32 to vector<8x32xf32>
    %131 = arith.mulf %130, %129 : vector<8x32xf32>
    %cst_75 = arith.constant 5.000000e-01 : f32
    %132 = vector.broadcast %cst_75 : f32 to vector<8x32xf32>
    %133 = arith.addf %131, %132 : vector<8x32xf32>
    %134 = arith.mulf %123, %101 : vector<8x32xf32>
    %135 = arith.mulf %115, %125 : vector<8x32xf32>
    %136 = arith.addf %134, %135 : vector<8x32xf32>
    %137 = math.tanh %136 : vector<8x32xf32>
    %138 = arith.mulf %133, %137 : vector<8x32xf32>
    %cst_76 = arith.constant dense<0.000000e+00> : vector<8x128xf32>
    %139 = tpu.matmul %138, %11, %cst_76 {dimension_numbers = #tpu.dot_dimension_numbers<[1], [0], [0], [1], [0, 0, 1, 1], [], []>} : vector<8x32xf32>, vector<32x128xf32>, vector<8x128xf32> -> vector<8x128xf32>
    %cst_77 = arith.constant dense<0.000000e+00> : vector<8x128xf32>
    %140 = tpu.matmul %102, %12, %cst_77 {dimension_numbers = #tpu.dot_dimension_numbers<[1], [0], [0], [1], [0, 0, 1, 1], [], []>} : vector<8x32xf32>, vector<32x128xf32>, vector<8x128xf32> -> vector<8x128xf32>
    %141 = arith.addf %139, %140 : vector<8x128xf32>
    %142 = arith.addf %141, %15 : vector<8x128xf32>
    %143 = vector.extract_strided_slice %142 {offsets = [0, 0], sizes = [8, 32], strides = [1, 1]} : vector<8x128xf32> to vector<8x32xf32>
    %cst_78 = arith.constant 5.000000e-01 : f32
    %144 = vector.broadcast %cst_78 : f32 to vector<8x32xf32>
    %145 = arith.mulf %144, %143 : vector<8x32xf32>
    %146 = math.tanh %145 : vector<8x32xf32>
    %cst_79 = arith.constant 5.000000e-01 : f32
    %147 = vector.broadcast %cst_79 : f32 to vector<8x32xf32>
    %148 = arith.mulf %147, %146 : vector<8x32xf32>
    %cst_80 = arith.constant 5.000000e-01 : f32
    %149 = vector.broadcast %cst_80 : f32 to vector<8x32xf32>
    %150 = arith.addf %148, %149 : vector<8x32xf32>
    %151 = vector.extract_strided_slice %142 {offsets = [0, 32], sizes = [8, 32], strides = [1, 1]} : vector<8x128xf32> to vector<8x32xf32>
    %cst_81 = arith.constant 5.000000e-01 : f32
    %152 = vector.broadcast %cst_81 : f32 to vector<8x32xf32>
    %153 = arith.mulf %152, %151 : vector<8x32xf32>
    %154 = math.tanh %153 : vector<8x32xf32>
    %cst_82 = arith.constant 5.000000e-01 : f32
    %155 = vector.broadcast %cst_82 : f32 to vector<8x32xf32>
    %156 = arith.mulf %155, %154 : vector<8x32xf32>
    %cst_83 = arith.constant 5.000000e-01 : f32
    %157 = vector.broadcast %cst_83 : f32 to vector<8x32xf32>
    %158 = arith.addf %156, %157 : vector<8x32xf32>
    %159 = vector.extract_strided_slice %142 {offsets = [0, 64], sizes = [8, 32], strides = [1, 1]} : vector<8x128xf32> to vector<8x32xf32>
    %160 = math.tanh %159 : vector<8x32xf32>
    %161 = vector.extract_strided_slice %142 {offsets = [0, 96], sizes = [8, 32], strides = [1, 1]} : vector<8x128xf32> to vector<8x32xf32>
    %cst_84 = arith.constant 5.000000e-01 : f32
    %162 = vector.broadcast %cst_84 : f32 to vector<8x32xf32>
    %163 = arith.mulf %162, %161 : vector<8x32xf32>
    %164 = math.tanh %163 : vector<8x32xf32>
    %cst_85 = arith.constant 5.000000e-01 : f32
    %165 = vector.broadcast %cst_85 : f32 to vector<8x32xf32>
    %166 = arith.mulf %165, %164 : vector<8x32xf32>
    %cst_86 = arith.constant 5.000000e-01 : f32
    %167 = vector.broadcast %cst_86 : f32 to vector<8x32xf32>
    %168 = arith.addf %166, %167 : vector<8x32xf32>
    %169 = arith.mulf %158, %103 : vector<8x32xf32>
    %170 = arith.mulf %150, %160 : vector<8x32xf32>
    %171 = arith.addf %169, %170 : vector<8x32xf32>
    %172 = math.tanh %171 : vector<8x32xf32>
    %173 = arith.mulf %168, %172 : vector<8x32xf32>
    %c0_87 = arith.constant 0 : index
    %c0_88 = arith.constant 0 : index
    %174 = vector.load %arg9[%c0_87, %c0_88] : memref<8x32xf32, #tpu.memory_space<vmem>>, vector<8x32xf32>
    tpu.vector_store %arg9[%c0_87, %c0_88], %138 {strides = array<i32>} : memref<8x32xf32, #tpu.memory_space<vmem>>, vector<8x32xf32>,
    %c0_89 = arith.constant 0 : index
    %c0_90 = arith.constant 0 : index
    %175 = vector.load %arg10[%c0_89, %c0_90] : memref<8x32xf32, #tpu.memory_space<vmem>>, vector<8x32xf32>
    tpu.vector_store %arg10[%c0_89, %c0_90], %136 {strides = array<i32>} : memref<8x32xf32, #tpu.memory_space<vmem>>, vector<8x32xf32>,
    %c0_91 = arith.constant 0 : index
    %c0_92 = arith.constant 0 : index
    %176 = vector.load %arg11[%c0_91, %c0_92] : memref<8x32xf32, #tpu.memory_space<vmem>>, vector<8x32xf32>
    tpu.vector_store %arg11[%c0_91, %c0_92], %173 {strides = array<i32>} : memref<8x32xf32, #tpu.memory_space<vmem>>, vector<8x32xf32>,
    %c0_93 = arith.constant 0 : index
    %c0_94 = arith.constant 0 : index
    %177 = vector.load %arg12[%c0_93, %c0_94] : memref<8x32xf32, #tpu.memory_space<vmem>>, vector<8x32xf32>
    tpu.vector_store %arg12[%c0_93, %c0_94], %171 {strides = array<i32>} : memref<8x32xf32, #tpu.memory_space<vmem>>, vector<8x32xf32>,
    %178 = arith.index_cast %99 : i32 to index
    %c0_95 = arith.constant 0 : index
    %179 = vector.load %arg8[%178, %c0_95] : memref<64x32xf32, #tpu.memory_space<vmem>>, vector<8x32xf32>
    tpu.vector_store %arg8[%178, %c0_95], %173 {strides = array<i32>} : memref<64x32xf32, #tpu.memory_space<vmem>>, vector<8x32xf32>,
    %c2_i32 = arith.constant 2 : i32
    %c8_i32_96 = arith.constant 8 : i32
    %180 = arith.muli %c2_i32, %c8_i32_96 : i32
    %181 = tpu.assume_multiple %180, 8 : i32
    %c0_97 = arith.constant 0 : index
    %c0_98 = arith.constant 0 : index
    %182 = vector.load %arg9[%c0_97, %c0_98] : memref<8x32xf32, #tpu.memory_space<vmem>>, vector<8x32xf32>
    %c0_99 = arith.constant 0 : index
    %c0_100 = arith.constant 0 : index
    %183 = vector.load %arg10[%c0_99, %c0_100] : memref<8x32xf32, #tpu.memory_space<vmem>>, vector<8x32xf32>
    %c0_101 = arith.constant 0 : index
    %c0_102 = arith.constant 0 : index
    %184 = vector.load %arg11[%c0_101, %c0_102] : memref<8x32xf32, #tpu.memory_space<vmem>>, vector<8x32xf32>
    %c0_103 = arith.constant 0 : index
    %c0_104 = arith.constant 0 : index
    %185 = vector.load %arg12[%c0_103, %c0_104] : memref<8x32xf32, #tpu.memory_space<vmem>>, vector<8x32xf32>
    %186 = arith.index_cast %181 : i32 to index
    %c0_105 = arith.constant 0 : index
    %187 = vector.load %arg13[%186, %c0_105] : memref<64x128xf32, #tpu.memory_space<vmem>>, vector<8x128xf32>
    %cst_106 = arith.constant dense<0.000000e+00> : vector<8x128xf32>
    %188 = tpu.matmul %182, %10, %cst_106 {dimension_numbers = #tpu.dot_dimension_numbers<[1], [0], [0], [1], [0, 0, 1, 1], [], []>} : vector<8x32xf32>, vector<32x128xf32>, vector<8x128xf32> -> vector<8x128xf32>
    %189 = arith.addf %187, %188 : vector<8x128xf32>
    %190 = vector.extract_strided_slice %189 {offsets = [0, 0], sizes = [8, 32], strides = [1, 1]} : vector<8x128xf32> to vector<8x32xf32>
    %cst_107 = arith.constant 5.000000e-01 : f32
    %191 = vector.broadcast %cst_107 : f32 to vector<8x32xf32>
    %192 = arith.mulf %191, %190 : vector<8x32xf32>
    %193 = math.tanh %192 : vector<8x32xf32>
    %cst_108 = arith.constant 5.000000e-01 : f32
    %194 = vector.broadcast %cst_108 : f32 to vector<8x32xf32>
    %195 = arith.mulf %194, %193 : vector<8x32xf32>
    %cst_109 = arith.constant 5.000000e-01 : f32
    %196 = vector.broadcast %cst_109 : f32 to vector<8x32xf32>
    %197 = arith.addf %195, %196 : vector<8x32xf32>
    %198 = vector.extract_strided_slice %189 {offsets = [0, 32], sizes = [8, 32], strides = [1, 1]} : vector<8x128xf32> to vector<8x32xf32>
    %cst_110 = arith.constant 5.000000e-01 : f32
    %199 = vector.broadcast %cst_110 : f32 to vector<8x32xf32>
    %200 = arith.mulf %199, %198 : vector<8x32xf32>
    %201 = math.tanh %200 : vector<8x32xf32>
    %cst_111 = arith.constant 5.000000e-01 : f32
    %202 = vector.broadcast %cst_111 : f32 to vector<8x32xf32>
    %203 = arith.mulf %202, %201 : vector<8x32xf32>
    %cst_112 = arith.constant 5.000000e-01 : f32
    %204 = vector.broadcast %cst_112 : f32 to vector<8x32xf32>
    %205 = arith.addf %203, %204 : vector<8x32xf32>
    %206 = vector.extract_strided_slice %189 {offsets = [0, 64], sizes = [8, 32], strides = [1, 1]} : vector<8x128xf32> to vector<8x32xf32>
    %207 = math.tanh %206 : vector<8x32xf32>
    %208 = vector.extract_strided_slice %189 {offsets = [0, 96], sizes = [8, 32], strides = [1, 1]} : vector<8x128xf32> to vector<8x32xf32>
    %cst_113 = arith.constant 5.000000e-01 : f32
    %209 = vector.broadcast %cst_113 : f32 to vector<8x32xf32>
    %210 = arith.mulf %209, %208 : vector<8x32xf32>
    %211 = math.tanh %210 : vector<8x32xf32>
    %cst_114 = arith.constant 5.000000e-01 : f32
    %212 = vector.broadcast %cst_114 : f32 to vector<8x32xf32>
    %213 = arith.mulf %212, %211 : vector<8x32xf32>
    %cst_115 = arith.constant 5.000000e-01 : f32
    %214 = vector.broadcast %cst_115 : f32 to vector<8x32xf32>
    %215 = arith.addf %213, %214 : vector<8x32xf32>
    %216 = arith.mulf %205, %183 : vector<8x32xf32>
    %217 = arith.mulf %197, %207 : vector<8x32xf32>
    %218 = arith.addf %216, %217 : vector<8x32xf32>
    %219 = math.tanh %218 : vector<8x32xf32>
    %220 = arith.mulf %215, %219 : vector<8x32xf32>
    %cst_116 = arith.constant dense<0.000000e+00> : vector<8x128xf32>
    %221 = tpu.matmul %220, %11, %cst_116 {dimension_numbers = #tpu.dot_dimension_numbers<[1], [0], [0], [1], [0, 0, 1, 1], [], []>} : vector<8x32xf32>, vector<32x128xf32>, vector<8x128xf32> -> vector<8x128xf32>
    %cst_117 = arith.constant dense<0.000000e+00> : vector<8x128xf32>
    %222 = tpu.matmul %184, %12, %cst_117 {dimension_numbers = #tpu.dot_dimension_numbers<[1], [0], [0], [1], [0, 0, 1, 1], [], []>} : vector<8x32xf32>, vector<32x128xf32>, vector<8x128xf32> -> vector<8x128xf32>
    %223 = arith.addf %221, %222 : vector<8x128xf32>
    %224 = arith.addf %223, %15 : vector<8x128xf32>
    %225 = vector.extract_strided_slice %224 {offsets = [0, 0], sizes = [8, 32], strides = [1, 1]} : vector<8x128xf32> to vector<8x32xf32>
    %cst_118 = arith.constant 5.000000e-01 : f32
    %226 = vector.broadcast %cst_118 : f32 to vector<8x32xf32>
    %227 = arith.mulf %226, %225 : vector<8x32xf32>
    %228 = math.tanh %227 : vector<8x32xf32>
    %cst_119 = arith.constant 5.000000e-01 : f32
    %229 = vector.broadcast %cst_119 : f32 to vector<8x32xf32>
    %230 = arith.mulf %229, %228 : vector<8x32xf32>
    %cst_120 = arith.constant 5.000000e-01 : f32
    %231 = vector.broadcast %cst_120 : f32 to vector<8x32xf32>
    %232 = arith.addf %230, %231 : vector<8x32xf32>
    %233 = vector.extract_strided_slice %224 {offsets = [0, 32], sizes = [8, 32], strides = [1, 1]} : vector<8x128xf32> to vector<8x32xf32>
    %cst_121 = arith.constant 5.000000e-01 : f32
    %234 = vector.broadcast %cst_121 : f32 to vector<8x32xf32>
    %235 = arith.mulf %234, %233 : vector<8x32xf32>
    %236 = math.tanh %235 : vector<8x32xf32>
    %cst_122 = arith.constant 5.000000e-01 : f32
    %237 = vector.broadcast %cst_122 : f32 to vector<8x32xf32>
    %238 = arith.mulf %237, %236 : vector<8x32xf32>
    %cst_123 = arith.constant 5.000000e-01 : f32
    %239 = vector.broadcast %cst_123 : f32 to vector<8x32xf32>
    %240 = arith.addf %238, %239 : vector<8x32xf32>
    %241 = vector.extract_strided_slice %224 {offsets = [0, 64], sizes = [8, 32], strides = [1, 1]} : vector<8x128xf32> to vector<8x32xf32>
    %242 = math.tanh %241 : vector<8x32xf32>
    %243 = vector.extract_strided_slice %224 {offsets = [0, 96], sizes = [8, 32], strides = [1, 1]} : vector<8x128xf32> to vector<8x32xf32>
    %cst_124 = arith.constant 5.000000e-01 : f32
    %244 = vector.broadcast %cst_124 : f32 to vector<8x32xf32>
    %245 = arith.mulf %244, %243 : vector<8x32xf32>
    %246 = math.tanh %245 : vector<8x32xf32>
    %cst_125 = arith.constant 5.000000e-01 : f32
    %247 = vector.broadcast %cst_125 : f32 to vector<8x32xf32>
    %248 = arith.mulf %247, %246 : vector<8x32xf32>
    %cst_126 = arith.constant 5.000000e-01 : f32
    %249 = vector.broadcast %cst_126 : f32 to vector<8x32xf32>
    %250 = arith.addf %248, %249 : vector<8x32xf32>
    %251 = arith.mulf %240, %185 : vector<8x32xf32>
    %252 = arith.mulf %232, %242 : vector<8x32xf32>
    %253 = arith.addf %251, %252 : vector<8x32xf32>
    %254 = math.tanh %253 : vector<8x32xf32>
    %255 = arith.mulf %250, %254 : vector<8x32xf32>
    %c0_127 = arith.constant 0 : index
    %c0_128 = arith.constant 0 : index
    %256 = vector.load %arg9[%c0_127, %c0_128] : memref<8x32xf32, #tpu.memory_space<vmem>>, vector<8x32xf32>
    tpu.vector_store %arg9[%c0_127, %c0_128], %220 {strides = array<i32>} : memref<8x32xf32, #tpu.memory_space<vmem>>, vector<8x32xf32>,
    %c0_129 = arith.constant 0 : index
    %c0_130 = arith.constant 0 : index
    %257 = vector.load %arg10[%c0_129, %c0_130] : memref<8x32xf32, #tpu.memory_space<vmem>>, vector<8x32xf32>
    tpu.vector_store %arg10[%c0_129, %c0_130], %218 {strides = array<i32>} : memref<8x32xf32, #tpu.memory_space<vmem>>, vector<8x32xf32>,
    %c0_131 = arith.constant 0 : index
    %c0_132 = arith.constant 0 : index
    %258 = vector.load %arg11[%c0_131, %c0_132] : memref<8x32xf32, #tpu.memory_space<vmem>>, vector<8x32xf32>
    tpu.vector_store %arg11[%c0_131, %c0_132], %255 {strides = array<i32>} : memref<8x32xf32, #tpu.memory_space<vmem>>, vector<8x32xf32>,
    %c0_133 = arith.constant 0 : index
    %c0_134 = arith.constant 0 : index
    %259 = vector.load %arg12[%c0_133, %c0_134] : memref<8x32xf32, #tpu.memory_space<vmem>>, vector<8x32xf32>
    tpu.vector_store %arg12[%c0_133, %c0_134], %253 {strides = array<i32>} : memref<8x32xf32, #tpu.memory_space<vmem>>, vector<8x32xf32>,
    %260 = arith.index_cast %181 : i32 to index
    %c0_135 = arith.constant 0 : index
    %261 = vector.load %arg8[%260, %c0_135] : memref<64x32xf32, #tpu.memory_space<vmem>>, vector<8x32xf32>
    tpu.vector_store %arg8[%260, %c0_135], %255 {strides = array<i32>} : memref<64x32xf32, #tpu.memory_space<vmem>>, vector<8x32xf32>,
    %c3_i32 = arith.constant 3 : i32
    %c8_i32_136 = arith.constant 8 : i32
    %262 = arith.muli %c3_i32, %c8_i32_136 : i32
    %263 = tpu.assume_multiple %262, 8 : i32
    %c0_137 = arith.constant 0 : index
    %c0_138 = arith.constant 0 : index
    %264 = vector.load %arg9[%c0_137, %c0_138] : memref<8x32xf32, #tpu.memory_space<vmem>>, vector<8x32xf32>
    %c0_139 = arith.constant 0 : index
    %c0_140 = arith.constant 0 : index
    %265 = vector.load %arg10[%c0_139, %c0_140] : memref<8x32xf32, #tpu.memory_space<vmem>>, vector<8x32xf32>
    %c0_141 = arith.constant 0 : index
    %c0_142 = arith.constant 0 : index
    %266 = vector.load %arg11[%c0_141, %c0_142] : memref<8x32xf32, #tpu.memory_space<vmem>>, vector<8x32xf32>
    %c0_143 = arith.constant 0 : index
    %c0_144 = arith.constant 0 : index
    %267 = vector.load %arg12[%c0_143, %c0_144] : memref<8x32xf32, #tpu.memory_space<vmem>>, vector<8x32xf32>
    %268 = arith.index_cast %263 : i32 to index
    %c0_145 = arith.constant 0 : index
    %269 = vector.load %arg13[%268, %c0_145] : memref<64x128xf32, #tpu.memory_space<vmem>>, vector<8x128xf32>
    %cst_146 = arith.constant dense<0.000000e+00> : vector<8x128xf32>
    %270 = tpu.matmul %264, %10, %cst_146 {dimension_numbers = #tpu.dot_dimension_numbers<[1], [0], [0], [1], [0, 0, 1, 1], [], []>} : vector<8x32xf32>, vector<32x128xf32>, vector<8x128xf32> -> vector<8x128xf32>
    %271 = arith.addf %269, %270 : vector<8x128xf32>
    %272 = vector.extract_strided_slice %271 {offsets = [0, 0], sizes = [8, 32], strides = [1, 1]} : vector<8x128xf32> to vector<8x32xf32>
    %cst_147 = arith.constant 5.000000e-01 : f32
    %273 = vector.broadcast %cst_147 : f32 to vector<8x32xf32>
    %274 = arith.mulf %273, %272 : vector<8x32xf32>
    %275 = math.tanh %274 : vector<8x32xf32>
    %cst_148 = arith.constant 5.000000e-01 : f32
    %276 = vector.broadcast %cst_148 : f32 to vector<8x32xf32>
    %277 = arith.mulf %276, %275 : vector<8x32xf32>
    %cst_149 = arith.constant 5.000000e-01 : f32
    %278 = vector.broadcast %cst_149 : f32 to vector<8x32xf32>
    %279 = arith.addf %277, %278 : vector<8x32xf32>
    %280 = vector.extract_strided_slice %271 {offsets = [0, 32], sizes = [8, 32], strides = [1, 1]} : vector<8x128xf32> to vector<8x32xf32>
    %cst_150 = arith.constant 5.000000e-01 : f32
    %281 = vector.broadcast %cst_150 : f32 to vector<8x32xf32>
    %282 = arith.mulf %281, %280 : vector<8x32xf32>
    %283 = math.tanh %282 : vector<8x32xf32>
    %cst_151 = arith.constant 5.000000e-01 : f32
    %284 = vector.broadcast %cst_151 : f32 to vector<8x32xf32>
    %285 = arith.mulf %284, %283 : vector<8x32xf32>
    %cst_152 = arith.constant 5.000000e-01 : f32
    %286 = vector.broadcast %cst_152 : f32 to vector<8x32xf32>
    %287 = arith.addf %285, %286 : vector<8x32xf32>
    %288 = vector.extract_strided_slice %271 {offsets = [0, 64], sizes = [8, 32], strides = [1, 1]} : vector<8x128xf32> to vector<8x32xf32>
    %289 = math.tanh %288 : vector<8x32xf32>
    %290 = vector.extract_strided_slice %271 {offsets = [0, 96], sizes = [8, 32], strides = [1, 1]} : vector<8x128xf32> to vector<8x32xf32>
    %cst_153 = arith.constant 5.000000e-01 : f32
    %291 = vector.broadcast %cst_153 : f32 to vector<8x32xf32>
    %292 = arith.mulf %291, %290 : vector<8x32xf32>
    %293 = math.tanh %292 : vector<8x32xf32>
    %cst_154 = arith.constant 5.000000e-01 : f32
    %294 = vector.broadcast %cst_154 : f32 to vector<8x32xf32>
    %295 = arith.mulf %294, %293 : vector<8x32xf32>
    %cst_155 = arith.constant 5.000000e-01 : f32
    %296 = vector.broadcast %cst_155 : f32 to vector<8x32xf32>
    %297 = arith.addf %295, %296 : vector<8x32xf32>
    %298 = arith.mulf %287, %265 : vector<8x32xf32>
    %299 = arith.mulf %279, %289 : vector<8x32xf32>
    %300 = arith.addf %298, %299 : vector<8x32xf32>
    %301 = math.tanh %300 : vector<8x32xf32>
    %302 = arith.mulf %297, %301 : vector<8x32xf32>
    %cst_156 = arith.constant dense<0.000000e+00> : vector<8x128xf32>
    %303 = tpu.matmul %302, %11, %cst_156 {dimension_numbers = #tpu.dot_dimension_numbers<[1], [0], [0], [1], [0, 0, 1, 1], [], []>} : vector<8x32xf32>, vector<32x128xf32>, vector<8x128xf32> -> vector<8x128xf32>
    %cst_157 = arith.constant dense<0.000000e+00> : vector<8x128xf32>
    %304 = tpu.matmul %266, %12, %cst_157 {dimension_numbers = #tpu.dot_dimension_numbers<[1], [0], [0], [1], [0, 0, 1, 1], [], []>} : vector<8x32xf32>, vector<32x128xf32>, vector<8x128xf32> -> vector<8x128xf32>
    %305 = arith.addf %303, %304 : vector<8x128xf32>
    %306 = arith.addf %305, %15 : vector<8x128xf32>
    %307 = vector.extract_strided_slice %306 {offsets = [0, 0], sizes = [8, 32], strides = [1, 1]} : vector<8x128xf32> to vector<8x32xf32>
    %cst_158 = arith.constant 5.000000e-01 : f32
    %308 = vector.broadcast %cst_158 : f32 to vector<8x32xf32>
    %309 = arith.mulf %308, %307 : vector<8x32xf32>
    %310 = math.tanh %309 : vector<8x32xf32>
    %cst_159 = arith.constant 5.000000e-01 : f32
    %311 = vector.broadcast %cst_159 : f32 to vector<8x32xf32>
    %312 = arith.mulf %311, %310 : vector<8x32xf32>
    %cst_160 = arith.constant 5.000000e-01 : f32
    %313 = vector.broadcast %cst_160 : f32 to vector<8x32xf32>
    %314 = arith.addf %312, %313 : vector<8x32xf32>
    %315 = vector.extract_strided_slice %306 {offsets = [0, 32], sizes = [8, 32], strides = [1, 1]} : vector<8x128xf32> to vector<8x32xf32>
    %cst_161 = arith.constant 5.000000e-01 : f32
    %316 = vector.broadcast %cst_161 : f32 to vector<8x32xf32>
    %317 = arith.mulf %316, %315 : vector<8x32xf32>
    %318 = math.tanh %317 : vector<8x32xf32>
    %cst_162 = arith.constant 5.000000e-01 : f32
    %319 = vector.broadcast %cst_162 : f32 to vector<8x32xf32>
    %320 = arith.mulf %319, %318 : vector<8x32xf32>
    %cst_163 = arith.constant 5.000000e-01 : f32
    %321 = vector.broadcast %cst_163 : f32 to vector<8x32xf32>
    %322 = arith.addf %320, %321 : vector<8x32xf32>
    %323 = vector.extract_strided_slice %306 {offsets = [0, 64], sizes = [8, 32], strides = [1, 1]} : vector<8x128xf32> to vector<8x32xf32>
    %324 = math.tanh %323 : vector<8x32xf32>
    %325 = vector.extract_strided_slice %306 {offsets = [0, 96], sizes = [8, 32], strides = [1, 1]} : vector<8x128xf32> to vector<8x32xf32>
    %cst_164 = arith.constant 5.000000e-01 : f32
    %326 = vector.broadcast %cst_164 : f32 to vector<8x32xf32>
    %327 = arith.mulf %326, %325 : vector<8x32xf32>
    %328 = math.tanh %327 : vector<8x32xf32>
    %cst_165 = arith.constant 5.000000e-01 : f32
    %329 = vector.broadcast %cst_165 : f32 to vector<8x32xf32>
    %330 = arith.mulf %329, %328 : vector<8x32xf32>
    %cst_166 = arith.constant 5.000000e-01 : f32
    %331 = vector.broadcast %cst_166 : f32 to vector<8x32xf32>
    %332 = arith.addf %330, %331 : vector<8x32xf32>
    %333 = arith.mulf %322, %267 : vector<8x32xf32>
    %334 = arith.mulf %314, %324 : vector<8x32xf32>
    %335 = arith.addf %333, %334 : vector<8x32xf32>
    %336 = math.tanh %335 : vector<8x32xf32>
    %337 = arith.mulf %332, %336 : vector<8x32xf32>
    %c0_167 = arith.constant 0 : index
    %c0_168 = arith.constant 0 : index
    %338 = vector.load %arg9[%c0_167, %c0_168] : memref<8x32xf32, #tpu.memory_space<vmem>>, vector<8x32xf32>
    tpu.vector_store %arg9[%c0_167, %c0_168], %302 {strides = array<i32>} : memref<8x32xf32, #tpu.memory_space<vmem>>, vector<8x32xf32>,
    %c0_169 = arith.constant 0 : index
    %c0_170 = arith.constant 0 : index
    %339 = vector.load %arg10[%c0_169, %c0_170] : memref<8x32xf32, #tpu.memory_space<vmem>>, vector<8x32xf32>
    tpu.vector_store %arg10[%c0_169, %c0_170], %300 {strides = array<i32>} : memref<8x32xf32, #tpu.memory_space<vmem>>, vector<8x32xf32>,
    %c0_171 = arith.constant 0 : index
    %c0_172 = arith.constant 0 : index
    %340 = vector.load %arg11[%c0_171, %c0_172] : memref<8x32xf32, #tpu.memory_space<vmem>>, vector<8x32xf32>
    tpu.vector_store %arg11[%c0_171, %c0_172], %337 {strides = array<i32>} : memref<8x32xf32, #tpu.memory_space<vmem>>, vector<8x32xf32>,
    %c0_173 = arith.constant 0 : index
    %c0_174 = arith.constant 0 : index
    %341 = vector.load %arg12[%c0_173, %c0_174] : memref<8x32xf32, #tpu.memory_space<vmem>>, vector<8x32xf32>
    tpu.vector_store %arg12[%c0_173, %c0_174], %335 {strides = array<i32>} : memref<8x32xf32, #tpu.memory_space<vmem>>, vector<8x32xf32>,
    %342 = arith.index_cast %263 : i32 to index
    %c0_175 = arith.constant 0 : index
    %343 = vector.load %arg8[%342, %c0_175] : memref<64x32xf32, #tpu.memory_space<vmem>>, vector<8x32xf32>
    tpu.vector_store %arg8[%342, %c0_175], %337 {strides = array<i32>} : memref<64x32xf32, #tpu.memory_space<vmem>>, vector<8x32xf32>,
    %c4_i32 = arith.constant 4 : i32
    %c8_i32_176 = arith.constant 8 : i32
    %344 = arith.muli %c4_i32, %c8_i32_176 : i32
    %345 = tpu.assume_multiple %344, 8 : i32
    %c0_177 = arith.constant 0 : index
    %c0_178 = arith.constant 0 : index
    %346 = vector.load %arg9[%c0_177, %c0_178] : memref<8x32xf32, #tpu.memory_space<vmem>>, vector<8x32xf32>
    %c0_179 = arith.constant 0 : index
    %c0_180 = arith.constant 0 : index
    %347 = vector.load %arg10[%c0_179, %c0_180] : memref<8x32xf32, #tpu.memory_space<vmem>>, vector<8x32xf32>
    %c0_181 = arith.constant 0 : index
    %c0_182 = arith.constant 0 : index
    %348 = vector.load %arg11[%c0_181, %c0_182] : memref<8x32xf32, #tpu.memory_space<vmem>>, vector<8x32xf32>
    %c0_183 = arith.constant 0 : index
    %c0_184 = arith.constant 0 : index
    %349 = vector.load %arg12[%c0_183, %c0_184] : memref<8x32xf32, #tpu.memory_space<vmem>>, vector<8x32xf32>
    %350 = arith.index_cast %345 : i32 to index
    %c0_185 = arith.constant 0 : index
    %351 = vector.load %arg13[%350, %c0_185] : memref<64x128xf32, #tpu.memory_space<vmem>>, vector<8x128xf32>
    %cst_186 = arith.constant dense<0.000000e+00> : vector<8x128xf32>
    %352 = tpu.matmul %346, %10, %cst_186 {dimension_numbers = #tpu.dot_dimension_numbers<[1], [0], [0], [1], [0, 0, 1, 1], [], []>} : vector<8x32xf32>, vector<32x128xf32>, vector<8x128xf32> -> vector<8x128xf32>
    %353 = arith.addf %351, %352 : vector<8x128xf32>
    %354 = vector.extract_strided_slice %353 {offsets = [0, 0], sizes = [8, 32], strides = [1, 1]} : vector<8x128xf32> to vector<8x32xf32>
    %cst_187 = arith.constant 5.000000e-01 : f32
    %355 = vector.broadcast %cst_187 : f32 to vector<8x32xf32>
    %356 = arith.mulf %355, %354 : vector<8x32xf32>
    %357 = math.tanh %356 : vector<8x32xf32>
    %cst_188 = arith.constant 5.000000e-01 : f32
    %358 = vector.broadcast %cst_188 : f32 to vector<8x32xf32>
    %359 = arith.mulf %358, %357 : vector<8x32xf32>
    %cst_189 = arith.constant 5.000000e-01 : f32
    %360 = vector.broadcast %cst_189 : f32 to vector<8x32xf32>
    %361 = arith.addf %359, %360 : vector<8x32xf32>
    %362 = vector.extract_strided_slice %353 {offsets = [0, 32], sizes = [8, 32], strides = [1, 1]} : vector<8x128xf32> to vector<8x32xf32>
    %cst_190 = arith.constant 5.000000e-01 : f32
    %363 = vector.broadcast %cst_190 : f32 to vector<8x32xf32>
    %364 = arith.mulf %363, %362 : vector<8x32xf32>
    %365 = math.tanh %364 : vector<8x32xf32>
    %cst_191 = arith.constant 5.000000e-01 : f32
    %366 = vector.broadcast %cst_191 : f32 to vector<8x32xf32>
    %367 = arith.mulf %366, %365 : vector<8x32xf32>
    %cst_192 = arith.constant 5.000000e-01 : f32
    %368 = vector.broadcast %cst_192 : f32 to vector<8x32xf32>
    %369 = arith.addf %367, %368 : vector<8x32xf32>
    %370 = vector.extract_strided_slice %353 {offsets = [0, 64], sizes = [8, 32], strides = [1, 1]} : vector<8x128xf32> to vector<8x32xf32>
    %371 = math.tanh %370 : vector<8x32xf32>
    %372 = vector.extract_strided_slice %353 {offsets = [0, 96], sizes = [8, 32], strides = [1, 1]} : vector<8x128xf32> to vector<8x32xf32>
    %cst_193 = arith.constant 5.000000e-01 : f32
    %373 = vector.broadcast %cst_193 : f32 to vector<8x32xf32>
    %374 = arith.mulf %373, %372 : vector<8x32xf32>
    %375 = math.tanh %374 : vector<8x32xf32>
    %cst_194 = arith.constant 5.000000e-01 : f32
    %376 = vector.broadcast %cst_194 : f32 to vector<8x32xf32>
    %377 = arith.mulf %376, %375 : vector<8x32xf32>
    %cst_195 = arith.constant 5.000000e-01 : f32
    %378 = vector.broadcast %cst_195 : f32 to vector<8x32xf32>
    %379 = arith.addf %377, %378 : vector<8x32xf32>
    %380 = arith.mulf %369, %347 : vector<8x32xf32>
    %381 = arith.mulf %361, %371 : vector<8x32xf32>
    %382 = arith.addf %380, %381 : vector<8x32xf32>
    %383 = math.tanh %382 : vector<8x32xf32>
    %384 = arith.mulf %379, %383 : vector<8x32xf32>
    %cst_196 = arith.constant dense<0.000000e+00> : vector<8x128xf32>
    %385 = tpu.matmul %384, %11, %cst_196 {dimension_numbers = #tpu.dot_dimension_numbers<[1], [0], [0], [1], [0, 0, 1, 1], [], []>} : vector<8x32xf32>, vector<32x128xf32>, vector<8x128xf32> -> vector<8x128xf32>
    %cst_197 = arith.constant dense<0.000000e+00> : vector<8x128xf32>
    %386 = tpu.matmul %348, %12, %cst_197 {dimension_numbers = #tpu.dot_dimension_numbers<[1], [0], [0], [1], [0, 0, 1, 1], [], []>} : vector<8x32xf32>, vector<32x128xf32>, vector<8x128xf32> -> vector<8x128xf32>
    %387 = arith.addf %385, %386 : vector<8x128xf32>
    %388 = arith.addf %387, %15 : vector<8x128xf32>
    %389 = vector.extract_strided_slice %388 {offsets = [0, 0], sizes = [8, 32], strides = [1, 1]} : vector<8x128xf32> to vector<8x32xf32>
    %cst_198 = arith.constant 5.000000e-01 : f32
    %390 = vector.broadcast %cst_198 : f32 to vector<8x32xf32>
    %391 = arith.mulf %390, %389 : vector<8x32xf32>
    %392 = math.tanh %391 : vector<8x32xf32>
    %cst_199 = arith.constant 5.000000e-01 : f32
    %393 = vector.broadcast %cst_199 : f32 to vector<8x32xf32>
    %394 = arith.mulf %393, %392 : vector<8x32xf32>
    %cst_200 = arith.constant 5.000000e-01 : f32
    %395 = vector.broadcast %cst_200 : f32 to vector<8x32xf32>
    %396 = arith.addf %394, %395 : vector<8x32xf32>
    %397 = vector.extract_strided_slice %388 {offsets = [0, 32], sizes = [8, 32], strides = [1, 1]} : vector<8x128xf32> to vector<8x32xf32>
    %cst_201 = arith.constant 5.000000e-01 : f32
    %398 = vector.broadcast %cst_201 : f32 to vector<8x32xf32>
    %399 = arith.mulf %398, %397 : vector<8x32xf32>
    %400 = math.tanh %399 : vector<8x32xf32>
    %cst_202 = arith.constant 5.000000e-01 : f32
    %401 = vector.broadcast %cst_202 : f32 to vector<8x32xf32>
    %402 = arith.mulf %401, %400 : vector<8x32xf32>
    %cst_203 = arith.constant 5.000000e-01 : f32
    %403 = vector.broadcast %cst_203 : f32 to vector<8x32xf32>
    %404 = arith.addf %402, %403 : vector<8x32xf32>
    %405 = vector.extract_strided_slice %388 {offsets = [0, 64], sizes = [8, 32], strides = [1, 1]} : vector<8x128xf32> to vector<8x32xf32>
    %406 = math.tanh %405 : vector<8x32xf32>
    %407 = vector.extract_strided_slice %388 {offsets = [0, 96], sizes = [8, 32], strides = [1, 1]} : vector<8x128xf32> to vector<8x32xf32>
    %cst_204 = arith.constant 5.000000e-01 : f32
    %408 = vector.broadcast %cst_204 : f32 to vector<8x32xf32>
    %409 = arith.mulf %408, %407 : vector<8x32xf32>
    %410 = math.tanh %409 : vector<8x32xf32>
    %cst_205 = arith.constant 5.000000e-01 : f32
    %411 = vector.broadcast %cst_205 : f32 to vector<8x32xf32>
    %412 = arith.mulf %411, %410 : vector<8x32xf32>
    %cst_206 = arith.constant 5.000000e-01 : f32
    %413 = vector.broadcast %cst_206 : f32 to vector<8x32xf32>
    %414 = arith.addf %412, %413 : vector<8x32xf32>
    %415 = arith.mulf %404, %349 : vector<8x32xf32>
    %416 = arith.mulf %396, %406 : vector<8x32xf32>
    %417 = arith.addf %415, %416 : vector<8x32xf32>
    %418 = math.tanh %417 : vector<8x32xf32>
    %419 = arith.mulf %414, %418 : vector<8x32xf32>
    %c0_207 = arith.constant 0 : index
    %c0_208 = arith.constant 0 : index
    %420 = vector.load %arg9[%c0_207, %c0_208] : memref<8x32xf32, #tpu.memory_space<vmem>>, vector<8x32xf32>
    tpu.vector_store %arg9[%c0_207, %c0_208], %384 {strides = array<i32>} : memref<8x32xf32, #tpu.memory_space<vmem>>, vector<8x32xf32>,
    %c0_209 = arith.constant 0 : index
    %c0_210 = arith.constant 0 : index
    %421 = vector.load %arg10[%c0_209, %c0_210] : memref<8x32xf32, #tpu.memory_space<vmem>>, vector<8x32xf32>
    tpu.vector_store %arg10[%c0_209, %c0_210], %382 {strides = array<i32>} : memref<8x32xf32, #tpu.memory_space<vmem>>, vector<8x32xf32>,
    %c0_211 = arith.constant 0 : index
    %c0_212 = arith.constant 0 : index
    %422 = vector.load %arg11[%c0_211, %c0_212] : memref<8x32xf32, #tpu.memory_space<vmem>>, vector<8x32xf32>
    tpu.vector_store %arg11[%c0_211, %c0_212], %419 {strides = array<i32>} : memref<8x32xf32, #tpu.memory_space<vmem>>, vector<8x32xf32>,
    %c0_213 = arith.constant 0 : index
    %c0_214 = arith.constant 0 : index
    %423 = vector.load %arg12[%c0_213, %c0_214] : memref<8x32xf32, #tpu.memory_space<vmem>>, vector<8x32xf32>
    tpu.vector_store %arg12[%c0_213, %c0_214], %417 {strides = array<i32>} : memref<8x32xf32, #tpu.memory_space<vmem>>, vector<8x32xf32>,
    %424 = arith.index_cast %345 : i32 to index
    %c0_215 = arith.constant 0 : index
    %425 = vector.load %arg8[%424, %c0_215] : memref<64x32xf32, #tpu.memory_space<vmem>>, vector<8x32xf32>
    tpu.vector_store %arg8[%424, %c0_215], %419 {strides = array<i32>} : memref<64x32xf32, #tpu.memory_space<vmem>>, vector<8x32xf32>,
    %c5_i32 = arith.constant 5 : i32
    %c8_i32_216 = arith.constant 8 : i32
    %426 = arith.muli %c5_i32, %c8_i32_216 : i32
    %427 = tpu.assume_multiple %426, 8 : i32
    %c0_217 = arith.constant 0 : index
    %c0_218 = arith.constant 0 : index
    %428 = vector.load %arg9[%c0_217, %c0_218] : memref<8x32xf32, #tpu.memory_space<vmem>>, vector<8x32xf32>
    %c0_219 = arith.constant 0 : index
    %c0_220 = arith.constant 0 : index
    %429 = vector.load %arg10[%c0_219, %c0_220] : memref<8x32xf32, #tpu.memory_space<vmem>>, vector<8x32xf32>
    %c0_221 = arith.constant 0 : index
    %c0_222 = arith.constant 0 : index
    %430 = vector.load %arg11[%c0_221, %c0_222] : memref<8x32xf32, #tpu.memory_space<vmem>>, vector<8x32xf32>
    %c0_223 = arith.constant 0 : index
    %c0_224 = arith.constant 0 : index
    %431 = vector.load %arg12[%c0_223, %c0_224] : memref<8x32xf32, #tpu.memory_space<vmem>>, vector<8x32xf32>
    %432 = arith.index_cast %427 : i32 to index
    %c0_225 = arith.constant 0 : index
    %433 = vector.load %arg13[%432, %c0_225] : memref<64x128xf32, #tpu.memory_space<vmem>>, vector<8x128xf32>
    %cst_226 = arith.constant dense<0.000000e+00> : vector<8x128xf32>
    %434 = tpu.matmul %428, %10, %cst_226 {dimension_numbers = #tpu.dot_dimension_numbers<[1], [0], [0], [1], [0, 0, 1, 1], [], []>} : vector<8x32xf32>, vector<32x128xf32>, vector<8x128xf32> -> vector<8x128xf32>
    %435 = arith.addf %433, %434 : vector<8x128xf32>
    %436 = vector.extract_strided_slice %435 {offsets = [0, 0], sizes = [8, 32], strides = [1, 1]} : vector<8x128xf32> to vector<8x32xf32>
    %cst_227 = arith.constant 5.000000e-01 : f32
    %437 = vector.broadcast %cst_227 : f32 to vector<8x32xf32>
    %438 = arith.mulf %437, %436 : vector<8x32xf32>
    %439 = math.tanh %438 : vector<8x32xf32>
    %cst_228 = arith.constant 5.000000e-01 : f32
    %440 = vector.broadcast %cst_228 : f32 to vector<8x32xf32>
    %441 = arith.mulf %440, %439 : vector<8x32xf32>
    %cst_229 = arith.constant 5.000000e-01 : f32
    %442 = vector.broadcast %cst_229 : f32 to vector<8x32xf32>
    %443 = arith.addf %441, %442 : vector<8x32xf32>
    %444 = vector.extract_strided_slice %435 {offsets = [0, 32], sizes = [8, 32], strides = [1, 1]} : vector<8x128xf32> to vector<8x32xf32>
    %cst_230 = arith.constant 5.000000e-01 : f32
    %445 = vector.broadcast %cst_230 : f32 to vector<8x32xf32>
    %446 = arith.mulf %445, %444 : vector<8x32xf32>
    %447 = math.tanh %446 : vector<8x32xf32>
    %cst_231 = arith.constant 5.000000e-01 : f32
    %448 = vector.broadcast %cst_231 : f32 to vector<8x32xf32>
    %449 = arith.mulf %448, %447 : vector<8x32xf32>
    %cst_232 = arith.constant 5.000000e-01 : f32
    %450 = vector.broadcast %cst_232 : f32 to vector<8x32xf32>
    %451 = arith.addf %449, %450 : vector<8x32xf32>
    %452 = vector.extract_strided_slice %435 {offsets = [0, 64], sizes = [8, 32], strides = [1, 1]} : vector<8x128xf32> to vector<8x32xf32>
    %453 = math.tanh %452 : vector<8x32xf32>
    %454 = vector.extract_strided_slice %435 {offsets = [0, 96], sizes = [8, 32], strides = [1, 1]} : vector<8x128xf32> to vector<8x32xf32>
    %cst_233 = arith.constant 5.000000e-01 : f32
    %455 = vector.broadcast %cst_233 : f32 to vector<8x32xf32>
    %456 = arith.mulf %455, %454 : vector<8x32xf32>
    %457 = math.tanh %456 : vector<8x32xf32>
    %cst_234 = arith.constant 5.000000e-01 : f32
    %458 = vector.broadcast %cst_234 : f32 to vector<8x32xf32>
    %459 = arith.mulf %458, %457 : vector<8x32xf32>
    %cst_235 = arith.constant 5.000000e-01 : f32
    %460 = vector.broadcast %cst_235 : f32 to vector<8x32xf32>
    %461 = arith.addf %459, %460 : vector<8x32xf32>
    %462 = arith.mulf %451, %429 : vector<8x32xf32>
    %463 = arith.mulf %443, %453 : vector<8x32xf32>
    %464 = arith.addf %462, %463 : vector<8x32xf32>
    %465 = math.tanh %464 : vector<8x32xf32>
    %466 = arith.mulf %461, %465 : vector<8x32xf32>
    %cst_236 = arith.constant dense<0.000000e+00> : vector<8x128xf32>
    %467 = tpu.matmul %466, %11, %cst_236 {dimension_numbers = #tpu.dot_dimension_numbers<[1], [0], [0], [1], [0, 0, 1, 1], [], []>} : vector<8x32xf32>, vector<32x128xf32>, vector<8x128xf32> -> vector<8x128xf32>
    %cst_237 = arith.constant dense<0.000000e+00> : vector<8x128xf32>
    %468 = tpu.matmul %430, %12, %cst_237 {dimension_numbers = #tpu.dot_dimension_numbers<[1], [0], [0], [1], [0, 0, 1, 1], [], []>} : vector<8x32xf32>, vector<32x128xf32>, vector<8x128xf32> -> vector<8x128xf32>
    %469 = arith.addf %467, %468 : vector<8x128xf32>
    %470 = arith.addf %469, %15 : vector<8x128xf32>
    %471 = vector.extract_strided_slice %470 {offsets = [0, 0], sizes = [8, 32], strides = [1, 1]} : vector<8x128xf32> to vector<8x32xf32>
    %cst_238 = arith.constant 5.000000e-01 : f32
    %472 = vector.broadcast %cst_238 : f32 to vector<8x32xf32>
    %473 = arith.mulf %472, %471 : vector<8x32xf32>
    %474 = math.tanh %473 : vector<8x32xf32>
    %cst_239 = arith.constant 5.000000e-01 : f32
    %475 = vector.broadcast %cst_239 : f32 to vector<8x32xf32>
    %476 = arith.mulf %475, %474 : vector<8x32xf32>
    %cst_240 = arith.constant 5.000000e-01 : f32
    %477 = vector.broadcast %cst_240 : f32 to vector<8x32xf32>
    %478 = arith.addf %476, %477 : vector<8x32xf32>
    %479 = vector.extract_strided_slice %470 {offsets = [0, 32], sizes = [8, 32], strides = [1, 1]} : vector<8x128xf32> to vector<8x32xf32>
    %cst_241 = arith.constant 5.000000e-01 : f32
    %480 = vector.broadcast %cst_241 : f32 to vector<8x32xf32>
    %481 = arith.mulf %480, %479 : vector<8x32xf32>
    %482 = math.tanh %481 : vector<8x32xf32>
    %cst_242 = arith.constant 5.000000e-01 : f32
    %483 = vector.broadcast %cst_242 : f32 to vector<8x32xf32>
    %484 = arith.mulf %483, %482 : vector<8x32xf32>
    %cst_243 = arith.constant 5.000000e-01 : f32
    %485 = vector.broadcast %cst_243 : f32 to vector<8x32xf32>
    %486 = arith.addf %484, %485 : vector<8x32xf32>
    %487 = vector.extract_strided_slice %470 {offsets = [0, 64], sizes = [8, 32], strides = [1, 1]} : vector<8x128xf32> to vector<8x32xf32>
    %488 = math.tanh %487 : vector<8x32xf32>
    %489 = vector.extract_strided_slice %470 {offsets = [0, 96], sizes = [8, 32], strides = [1, 1]} : vector<8x128xf32> to vector<8x32xf32>
    %cst_244 = arith.constant 5.000000e-01 : f32
    %490 = vector.broadcast %cst_244 : f32 to vector<8x32xf32>
    %491 = arith.mulf %490, %489 : vector<8x32xf32>
    %492 = math.tanh %491 : vector<8x32xf32>
    %cst_245 = arith.constant 5.000000e-01 : f32
    %493 = vector.broadcast %cst_245 : f32 to vector<8x32xf32>
    %494 = arith.mulf %493, %492 : vector<8x32xf32>
    %cst_246 = arith.constant 5.000000e-01 : f32
    %495 = vector.broadcast %cst_246 : f32 to vector<8x32xf32>
    %496 = arith.addf %494, %495 : vector<8x32xf32>
    %497 = arith.mulf %486, %431 : vector<8x32xf32>
    %498 = arith.mulf %478, %488 : vector<8x32xf32>
    %499 = arith.addf %497, %498 : vector<8x32xf32>
    %500 = math.tanh %499 : vector<8x32xf32>
    %501 = arith.mulf %496, %500 : vector<8x32xf32>
    %c0_247 = arith.constant 0 : index
    %c0_248 = arith.constant 0 : index
    %502 = vector.load %arg9[%c0_247, %c0_248] : memref<8x32xf32, #tpu.memory_space<vmem>>, vector<8x32xf32>
    tpu.vector_store %arg9[%c0_247, %c0_248], %466 {strides = array<i32>} : memref<8x32xf32, #tpu.memory_space<vmem>>, vector<8x32xf32>,
    %c0_249 = arith.constant 0 : index
    %c0_250 = arith.constant 0 : index
    %503 = vector.load %arg10[%c0_249, %c0_250] : memref<8x32xf32, #tpu.memory_space<vmem>>, vector<8x32xf32>
    tpu.vector_store %arg10[%c0_249, %c0_250], %464 {strides = array<i32>} : memref<8x32xf32, #tpu.memory_space<vmem>>, vector<8x32xf32>,
    %c0_251 = arith.constant 0 : index
    %c0_252 = arith.constant 0 : index
    %504 = vector.load %arg11[%c0_251, %c0_252] : memref<8x32xf32, #tpu.memory_space<vmem>>, vector<8x32xf32>
    tpu.vector_store %arg11[%c0_251, %c0_252], %501 {strides = array<i32>} : memref<8x32xf32, #tpu.memory_space<vmem>>, vector<8x32xf32>,
    %c0_253 = arith.constant 0 : index
    %c0_254 = arith.constant 0 : index
    %505 = vector.load %arg12[%c0_253, %c0_254] : memref<8x32xf32, #tpu.memory_space<vmem>>, vector<8x32xf32>
    tpu.vector_store %arg12[%c0_253, %c0_254], %499 {strides = array<i32>} : memref<8x32xf32, #tpu.memory_space<vmem>>, vector<8x32xf32>,
    %506 = arith.index_cast %427 : i32 to index
    %c0_255 = arith.constant 0 : index
    %507 = vector.load %arg8[%506, %c0_255] : memref<64x32xf32, #tpu.memory_space<vmem>>, vector<8x32xf32>
    tpu.vector_store %arg8[%506, %c0_255], %501 {strides = array<i32>} : memref<64x32xf32, #tpu.memory_space<vmem>>, vector<8x32xf32>,
    %c6_i32 = arith.constant 6 : i32
    %c8_i32_256 = arith.constant 8 : i32
    %508 = arith.muli %c6_i32, %c8_i32_256 : i32
    %509 = tpu.assume_multiple %508, 8 : i32
    %c0_257 = arith.constant 0 : index
    %c0_258 = arith.constant 0 : index
    %510 = vector.load %arg9[%c0_257, %c0_258] : memref<8x32xf32, #tpu.memory_space<vmem>>, vector<8x32xf32>
    %c0_259 = arith.constant 0 : index
    %c0_260 = arith.constant 0 : index
    %511 = vector.load %arg10[%c0_259, %c0_260] : memref<8x32xf32, #tpu.memory_space<vmem>>, vector<8x32xf32>
    %c0_261 = arith.constant 0 : index
    %c0_262 = arith.constant 0 : index
    %512 = vector.load %arg11[%c0_261, %c0_262] : memref<8x32xf32, #tpu.memory_space<vmem>>, vector<8x32xf32>
    %c0_263 = arith.constant 0 : index
    %c0_264 = arith.constant 0 : index
    %513 = vector.load %arg12[%c0_263, %c0_264] : memref<8x32xf32, #tpu.memory_space<vmem>>, vector<8x32xf32>
    %514 = arith.index_cast %509 : i32 to index
    %c0_265 = arith.constant 0 : index
    %515 = vector.load %arg13[%514, %c0_265] : memref<64x128xf32, #tpu.memory_space<vmem>>, vector<8x128xf32>
    %cst_266 = arith.constant dense<0.000000e+00> : vector<8x128xf32>
    %516 = tpu.matmul %510, %10, %cst_266 {dimension_numbers = #tpu.dot_dimension_numbers<[1], [0], [0], [1], [0, 0, 1, 1], [], []>} : vector<8x32xf32>, vector<32x128xf32>, vector<8x128xf32> -> vector<8x128xf32>
    %517 = arith.addf %515, %516 : vector<8x128xf32>
    %518 = vector.extract_strided_slice %517 {offsets = [0, 0], sizes = [8, 32], strides = [1, 1]} : vector<8x128xf32> to vector<8x32xf32>
    %cst_267 = arith.constant 5.000000e-01 : f32
    %519 = vector.broadcast %cst_267 : f32 to vector<8x32xf32>
    %520 = arith.mulf %519, %518 : vector<8x32xf32>
    %521 = math.tanh %520 : vector<8x32xf32>
    %cst_268 = arith.constant 5.000000e-01 : f32
    %522 = vector.broadcast %cst_268 : f32 to vector<8x32xf32>
    %523 = arith.mulf %522, %521 : vector<8x32xf32>
    %cst_269 = arith.constant 5.000000e-01 : f32
    %524 = vector.broadcast %cst_269 : f32 to vector<8x32xf32>
    %525 = arith.addf %523, %524 : vector<8x32xf32>
    %526 = vector.extract_strided_slice %517 {offsets = [0, 32], sizes = [8, 32], strides = [1, 1]} : vector<8x128xf32> to vector<8x32xf32>
    %cst_270 = arith.constant 5.000000e-01 : f32
    %527 = vector.broadcast %cst_270 : f32 to vector<8x32xf32>
    %528 = arith.mulf %527, %526 : vector<8x32xf32>
    %529 = math.tanh %528 : vector<8x32xf32>
    %cst_271 = arith.constant 5.000000e-01 : f32
    %530 = vector.broadcast %cst_271 : f32 to vector<8x32xf32>
    %531 = arith.mulf %530, %529 : vector<8x32xf32>
    %cst_272 = arith.constant 5.000000e-01 : f32
    %532 = vector.broadcast %cst_272 : f32 to vector<8x32xf32>
    %533 = arith.addf %531, %532 : vector<8x32xf32>
    %534 = vector.extract_strided_slice %517 {offsets = [0, 64], sizes = [8, 32], strides = [1, 1]} : vector<8x128xf32> to vector<8x32xf32>
    %535 = math.tanh %534 : vector<8x32xf32>
    %536 = vector.extract_strided_slice %517 {offsets = [0, 96], sizes = [8, 32], strides = [1, 1]} : vector<8x128xf32> to vector<8x32xf32>
    %cst_273 = arith.constant 5.000000e-01 : f32
    %537 = vector.broadcast %cst_273 : f32 to vector<8x32xf32>
    %538 = arith.mulf %537, %536 : vector<8x32xf32>
    %539 = math.tanh %538 : vector<8x32xf32>
    %cst_274 = arith.constant 5.000000e-01 : f32
    %540 = vector.broadcast %cst_274 : f32 to vector<8x32xf32>
    %541 = arith.mulf %540, %539 : vector<8x32xf32>
    %cst_275 = arith.constant 5.000000e-01 : f32
    %542 = vector.broadcast %cst_275 : f32 to vector<8x32xf32>
    %543 = arith.addf %541, %542 : vector<8x32xf32>
    %544 = arith.mulf %533, %511 : vector<8x32xf32>
    %545 = arith.mulf %525, %535 : vector<8x32xf32>
    %546 = arith.addf %544, %545 : vector<8x32xf32>
    %547 = math.tanh %546 : vector<8x32xf32>
    %548 = arith.mulf %543, %547 : vector<8x32xf32>
    %cst_276 = arith.constant dense<0.000000e+00> : vector<8x128xf32>
    %549 = tpu.matmul %548, %11, %cst_276 {dimension_numbers = #tpu.dot_dimension_numbers<[1], [0], [0], [1], [0, 0, 1, 1], [], []>} : vector<8x32xf32>, vector<32x128xf32>, vector<8x128xf32> -> vector<8x128xf32>
    %cst_277 = arith.constant dense<0.000000e+00> : vector<8x128xf32>
    %550 = tpu.matmul %512, %12, %cst_277 {dimension_numbers = #tpu.dot_dimension_numbers<[1], [0], [0], [1], [0, 0, 1, 1], [], []>} : vector<8x32xf32>, vector<32x128xf32>, vector<8x128xf32> -> vector<8x128xf32>
    %551 = arith.addf %549, %550 : vector<8x128xf32>
    %552 = arith.addf %551, %15 : vector<8x128xf32>
    %553 = vector.extract_strided_slice %552 {offsets = [0, 0], sizes = [8, 32], strides = [1, 1]} : vector<8x128xf32> to vector<8x32xf32>
    %cst_278 = arith.constant 5.000000e-01 : f32
    %554 = vector.broadcast %cst_278 : f32 to vector<8x32xf32>
    %555 = arith.mulf %554, %553 : vector<8x32xf32>
    %556 = math.tanh %555 : vector<8x32xf32>
    %cst_279 = arith.constant 5.000000e-01 : f32
    %557 = vector.broadcast %cst_279 : f32 to vector<8x32xf32>
    %558 = arith.mulf %557, %556 : vector<8x32xf32>
    %cst_280 = arith.constant 5.000000e-01 : f32
    %559 = vector.broadcast %cst_280 : f32 to vector<8x32xf32>
    %560 = arith.addf %558, %559 : vector<8x32xf32>
    %561 = vector.extract_strided_slice %552 {offsets = [0, 32], sizes = [8, 32], strides = [1, 1]} : vector<8x128xf32> to vector<8x32xf32>
    %cst_281 = arith.constant 5.000000e-01 : f32
    %562 = vector.broadcast %cst_281 : f32 to vector<8x32xf32>
    %563 = arith.mulf %562, %561 : vector<8x32xf32>
    %564 = math.tanh %563 : vector<8x32xf32>
    %cst_282 = arith.constant 5.000000e-01 : f32
    %565 = vector.broadcast %cst_282 : f32 to vector<8x32xf32>
    %566 = arith.mulf %565, %564 : vector<8x32xf32>
    %cst_283 = arith.constant 5.000000e-01 : f32
    %567 = vector.broadcast %cst_283 : f32 to vector<8x32xf32>
    %568 = arith.addf %566, %567 : vector<8x32xf32>
    %569 = vector.extract_strided_slice %552 {offsets = [0, 64], sizes = [8, 32], strides = [1, 1]} : vector<8x128xf32> to vector<8x32xf32>
    %570 = math.tanh %569 : vector<8x32xf32>
    %571 = vector.extract_strided_slice %552 {offsets = [0, 96], sizes = [8, 32], strides = [1, 1]} : vector<8x128xf32> to vector<8x32xf32>
    %cst_284 = arith.constant 5.000000e-01 : f32
    %572 = vector.broadcast %cst_284 : f32 to vector<8x32xf32>
    %573 = arith.mulf %572, %571 : vector<8x32xf32>
    %574 = math.tanh %573 : vector<8x32xf32>
    %cst_285 = arith.constant 5.000000e-01 : f32
    %575 = vector.broadcast %cst_285 : f32 to vector<8x32xf32>
    %576 = arith.mulf %575, %574 : vector<8x32xf32>
    %cst_286 = arith.constant 5.000000e-01 : f32
    %577 = vector.broadcast %cst_286 : f32 to vector<8x32xf32>
    %578 = arith.addf %576, %577 : vector<8x32xf32>
    %579 = arith.mulf %568, %513 : vector<8x32xf32>
    %580 = arith.mulf %560, %570 : vector<8x32xf32>
    %581 = arith.addf %579, %580 : vector<8x32xf32>
    %582 = math.tanh %581 : vector<8x32xf32>
    %583 = arith.mulf %578, %582 : vector<8x32xf32>
    %c0_287 = arith.constant 0 : index
    %c0_288 = arith.constant 0 : index
    %584 = vector.load %arg9[%c0_287, %c0_288] : memref<8x32xf32, #tpu.memory_space<vmem>>, vector<8x32xf32>
    tpu.vector_store %arg9[%c0_287, %c0_288], %548 {strides = array<i32>} : memref<8x32xf32, #tpu.memory_space<vmem>>, vector<8x32xf32>,
    %c0_289 = arith.constant 0 : index
    %c0_290 = arith.constant 0 : index
    %585 = vector.load %arg10[%c0_289, %c0_290] : memref<8x32xf32, #tpu.memory_space<vmem>>, vector<8x32xf32>
    tpu.vector_store %arg10[%c0_289, %c0_290], %546 {strides = array<i32>} : memref<8x32xf32, #tpu.memory_space<vmem>>, vector<8x32xf32>,
    %c0_291 = arith.constant 0 : index
    %c0_292 = arith.constant 0 : index
    %586 = vector.load %arg11[%c0_291, %c0_292] : memref<8x32xf32, #tpu.memory_space<vmem>>, vector<8x32xf32>
    tpu.vector_store %arg11[%c0_291, %c0_292], %583 {strides = array<i32>} : memref<8x32xf32, #tpu.memory_space<vmem>>, vector<8x32xf32>,
    %c0_293 = arith.constant 0 : index
    %c0_294 = arith.constant 0 : index
    %587 = vector.load %arg12[%c0_293, %c0_294] : memref<8x32xf32, #tpu.memory_space<vmem>>, vector<8x32xf32>
    tpu.vector_store %arg12[%c0_293, %c0_294], %581 {strides = array<i32>} : memref<8x32xf32, #tpu.memory_space<vmem>>, vector<8x32xf32>,
    %588 = arith.index_cast %509 : i32 to index
    %c0_295 = arith.constant 0 : index
    %589 = vector.load %arg8[%588, %c0_295] : memref<64x32xf32, #tpu.memory_space<vmem>>, vector<8x32xf32>
    tpu.vector_store %arg8[%588, %c0_295], %583 {strides = array<i32>} : memref<64x32xf32, #tpu.memory_space<vmem>>, vector<8x32xf32>,
    %c7_i32 = arith.constant 7 : i32
    %c8_i32_296 = arith.constant 8 : i32
    %590 = arith.muli %c7_i32, %c8_i32_296 : i32
    %591 = tpu.assume_multiple %590, 8 : i32
    %c0_297 = arith.constant 0 : index
    %c0_298 = arith.constant 0 : index
    %592 = vector.load %arg9[%c0_297, %c0_298] : memref<8x32xf32, #tpu.memory_space<vmem>>, vector<8x32xf32>
    %c0_299 = arith.constant 0 : index
    %c0_300 = arith.constant 0 : index
    %593 = vector.load %arg10[%c0_299, %c0_300] : memref<8x32xf32, #tpu.memory_space<vmem>>, vector<8x32xf32>
    %c0_301 = arith.constant 0 : index
    %c0_302 = arith.constant 0 : index
    %594 = vector.load %arg11[%c0_301, %c0_302] : memref<8x32xf32, #tpu.memory_space<vmem>>, vector<8x32xf32>
    %c0_303 = arith.constant 0 : index
    %c0_304 = arith.constant 0 : index
    %595 = vector.load %arg12[%c0_303, %c0_304] : memref<8x32xf32, #tpu.memory_space<vmem>>, vector<8x32xf32>
    %596 = arith.index_cast %591 : i32 to index
    %c0_305 = arith.constant 0 : index
    %597 = vector.load %arg13[%596, %c0_305] : memref<64x128xf32, #tpu.memory_space<vmem>>, vector<8x128xf32>
    %cst_306 = arith.constant dense<0.000000e+00> : vector<8x128xf32>
    %598 = tpu.matmul %592, %10, %cst_306 {dimension_numbers = #tpu.dot_dimension_numbers<[1], [0], [0], [1], [0, 0, 1, 1], [], []>} : vector<8x32xf32>, vector<32x128xf32>, vector<8x128xf32> -> vector<8x128xf32>
    %599 = arith.addf %597, %598 : vector<8x128xf32>
    %600 = vector.extract_strided_slice %599 {offsets = [0, 0], sizes = [8, 32], strides = [1, 1]} : vector<8x128xf32> to vector<8x32xf32>
    %cst_307 = arith.constant 5.000000e-01 : f32
    %601 = vector.broadcast %cst_307 : f32 to vector<8x32xf32>
    %602 = arith.mulf %601, %600 : vector<8x32xf32>
    %603 = math.tanh %602 : vector<8x32xf32>
    %cst_308 = arith.constant 5.000000e-01 : f32
    %604 = vector.broadcast %cst_308 : f32 to vector<8x32xf32>
    %605 = arith.mulf %604, %603 : vector<8x32xf32>
    %cst_309 = arith.constant 5.000000e-01 : f32
    %606 = vector.broadcast %cst_309 : f32 to vector<8x32xf32>
    %607 = arith.addf %605, %606 : vector<8x32xf32>
    %608 = vector.extract_strided_slice %599 {offsets = [0, 32], sizes = [8, 32], strides = [1, 1]} : vector<8x128xf32> to vector<8x32xf32>
    %cst_310 = arith.constant 5.000000e-01 : f32
    %609 = vector.broadcast %cst_310 : f32 to vector<8x32xf32>
    %610 = arith.mulf %609, %608 : vector<8x32xf32>
    %611 = math.tanh %610 : vector<8x32xf32>
    %cst_311 = arith.constant 5.000000e-01 : f32
    %612 = vector.broadcast %cst_311 : f32 to vector<8x32xf32>
    %613 = arith.mulf %612, %611 : vector<8x32xf32>
    %cst_312 = arith.constant 5.000000e-01 : f32
    %614 = vector.broadcast %cst_312 : f32 to vector<8x32xf32>
    %615 = arith.addf %613, %614 : vector<8x32xf32>
    %616 = vector.extract_strided_slice %599 {offsets = [0, 64], sizes = [8, 32], strides = [1, 1]} : vector<8x128xf32> to vector<8x32xf32>
    %617 = math.tanh %616 : vector<8x32xf32>
    %618 = vector.extract_strided_slice %599 {offsets = [0, 96], sizes = [8, 32], strides = [1, 1]} : vector<8x128xf32> to vector<8x32xf32>
    %cst_313 = arith.constant 5.000000e-01 : f32
    %619 = vector.broadcast %cst_313 : f32 to vector<8x32xf32>
    %620 = arith.mulf %619, %618 : vector<8x32xf32>
    %621 = math.tanh %620 : vector<8x32xf32>
    %cst_314 = arith.constant 5.000000e-01 : f32
    %622 = vector.broadcast %cst_314 : f32 to vector<8x32xf32>
    %623 = arith.mulf %622, %621 : vector<8x32xf32>
    %cst_315 = arith.constant 5.000000e-01 : f32
    %624 = vector.broadcast %cst_315 : f32 to vector<8x32xf32>
    %625 = arith.addf %623, %624 : vector<8x32xf32>
    %626 = arith.mulf %615, %593 : vector<8x32xf32>
    %627 = arith.mulf %607, %617 : vector<8x32xf32>
    %628 = arith.addf %626, %627 : vector<8x32xf32>
    %629 = math.tanh %628 : vector<8x32xf32>
    %630 = arith.mulf %625, %629 : vector<8x32xf32>
    %cst_316 = arith.constant dense<0.000000e+00> : vector<8x128xf32>
    %631 = tpu.matmul %630, %11, %cst_316 {dimension_numbers = #tpu.dot_dimension_numbers<[1], [0], [0], [1], [0, 0, 1, 1], [], []>} : vector<8x32xf32>, vector<32x128xf32>, vector<8x128xf32> -> vector<8x128xf32>
    %cst_317 = arith.constant dense<0.000000e+00> : vector<8x128xf32>
    %632 = tpu.matmul %594, %12, %cst_317 {dimension_numbers = #tpu.dot_dimension_numbers<[1], [0], [0], [1], [0, 0, 1, 1], [], []>} : vector<8x32xf32>, vector<32x128xf32>, vector<8x128xf32> -> vector<8x128xf32>
    %633 = arith.addf %631, %632 : vector<8x128xf32>
    %634 = arith.addf %633, %15 : vector<8x128xf32>
    %635 = vector.extract_strided_slice %634 {offsets = [0, 0], sizes = [8, 32], strides = [1, 1]} : vector<8x128xf32> to vector<8x32xf32>
    %cst_318 = arith.constant 5.000000e-01 : f32
    %636 = vector.broadcast %cst_318 : f32 to vector<8x32xf32>
    %637 = arith.mulf %636, %635 : vector<8x32xf32>
    %638 = math.tanh %637 : vector<8x32xf32>
    %cst_319 = arith.constant 5.000000e-01 : f32
    %639 = vector.broadcast %cst_319 : f32 to vector<8x32xf32>
    %640 = arith.mulf %639, %638 : vector<8x32xf32>
    %cst_320 = arith.constant 5.000000e-01 : f32
    %641 = vector.broadcast %cst_320 : f32 to vector<8x32xf32>
    %642 = arith.addf %640, %641 : vector<8x32xf32>
    %643 = vector.extract_strided_slice %634 {offsets = [0, 32], sizes = [8, 32], strides = [1, 1]} : vector<8x128xf32> to vector<8x32xf32>
    %cst_321 = arith.constant 5.000000e-01 : f32
    %644 = vector.broadcast %cst_321 : f32 to vector<8x32xf32>
    %645 = arith.mulf %644, %643 : vector<8x32xf32>
    %646 = math.tanh %645 : vector<8x32xf32>
    %cst_322 = arith.constant 5.000000e-01 : f32
    %647 = vector.broadcast %cst_322 : f32 to vector<8x32xf32>
    %648 = arith.mulf %647, %646 : vector<8x32xf32>
    %cst_323 = arith.constant 5.000000e-01 : f32
    %649 = vector.broadcast %cst_323 : f32 to vector<8x32xf32>
    %650 = arith.addf %648, %649 : vector<8x32xf32>
    %651 = vector.extract_strided_slice %634 {offsets = [0, 64], sizes = [8, 32], strides = [1, 1]} : vector<8x128xf32> to vector<8x32xf32>
    %652 = math.tanh %651 : vector<8x32xf32>
    %653 = vector.extract_strided_slice %634 {offsets = [0, 96], sizes = [8, 32], strides = [1, 1]} : vector<8x128xf32> to vector<8x32xf32>
    %cst_324 = arith.constant 5.000000e-01 : f32
    %654 = vector.broadcast %cst_324 : f32 to vector<8x32xf32>
    %655 = arith.mulf %654, %653 : vector<8x32xf32>
    %656 = math.tanh %655 : vector<8x32xf32>
    %cst_325 = arith.constant 5.000000e-01 : f32
    %657 = vector.broadcast %cst_325 : f32 to vector<8x32xf32>
    %658 = arith.mulf %657, %656 : vector<8x32xf32>
    %cst_326 = arith.constant 5.000000e-01 : f32
    %659 = vector.broadcast %cst_326 : f32 to vector<8x32xf32>
    %660 = arith.addf %658, %659 : vector<8x32xf32>
    %661 = arith.mulf %650, %595 : vector<8x32xf32>
    %662 = arith.mulf %642, %652 : vector<8x32xf32>
    %663 = arith.addf %661, %662 : vector<8x32xf32>
    %664 = math.tanh %663 : vector<8x32xf32>
    %665 = arith.mulf %660, %664 : vector<8x32xf32>
    %c0_327 = arith.constant 0 : index
    %c0_328 = arith.constant 0 : index
    %666 = vector.load %arg9[%c0_327, %c0_328] : memref<8x32xf32, #tpu.memory_space<vmem>>, vector<8x32xf32>
    tpu.vector_store %arg9[%c0_327, %c0_328], %630 {strides = array<i32>} : memref<8x32xf32, #tpu.memory_space<vmem>>, vector<8x32xf32>,
    %c0_329 = arith.constant 0 : index
    %c0_330 = arith.constant 0 : index
    %667 = vector.load %arg10[%c0_329, %c0_330] : memref<8x32xf32, #tpu.memory_space<vmem>>, vector<8x32xf32>
    tpu.vector_store %arg10[%c0_329, %c0_330], %628 {strides = array<i32>} : memref<8x32xf32, #tpu.memory_space<vmem>>, vector<8x32xf32>,
    %c0_331 = arith.constant 0 : index
    %c0_332 = arith.constant 0 : index
    %668 = vector.load %arg11[%c0_331, %c0_332] : memref<8x32xf32, #tpu.memory_space<vmem>>, vector<8x32xf32>
    tpu.vector_store %arg11[%c0_331, %c0_332], %665 {strides = array<i32>} : memref<8x32xf32, #tpu.memory_space<vmem>>, vector<8x32xf32>,
    %c0_333 = arith.constant 0 : index
    %c0_334 = arith.constant 0 : index
    %669 = vector.load %arg12[%c0_333, %c0_334] : memref<8x32xf32, #tpu.memory_space<vmem>>, vector<8x32xf32>
    tpu.vector_store %arg12[%c0_333, %c0_334], %663 {strides = array<i32>} : memref<8x32xf32, #tpu.memory_space<vmem>>, vector<8x32xf32>,
    %670 = arith.index_cast %591 : i32 to index
    %c0_335 = arith.constant 0 : index
    %671 = vector.load %arg8[%670, %c0_335] : memref<64x32xf32, #tpu.memory_space<vmem>>, vector<8x32xf32>
    tpu.vector_store %arg8[%670, %c0_335], %665 {strides = array<i32>} : memref<64x32xf32, #tpu.memory_space<vmem>>, vector<8x32xf32>,
    %c8_i32_336 = arith.constant 8 : i32
    return
  }
  func.func @transform_0(%arg0: i32) -> (i32, i32) {
    %c0_i32 = arith.constant 0 : i32
    %c0_i32_0 = arith.constant 0 : i32
    return %arg0, %c0_i32 : i32, i32
  }
  func.func @transform_1(%arg0: i32) -> (i32, i32) {
    %c0_i32 = arith.constant 0 : i32
    %c0_i32_0 = arith.constant 0 : i32
    %c0_i32_1 = arith.constant 0 : i32
    return %c0_i32, %c0_i32_0 : i32, i32
  }
  func.func @transform_2(%arg0: i32) -> (i32, i32) {
    %c0_i32 = arith.constant 0 : i32
    %c0_i32_0 = arith.constant 0 : i32
    %c0_i32_1 = arith.constant 0 : i32
    return %c0_i32, %c0_i32_0 : i32, i32
  }
  func.func @transform_3(%arg0: i32) -> (i32, i32) {
    %c0_i32 = arith.constant 0 : i32
    %c0_i32_0 = arith.constant 0 : i32
    %c0_i32_1 = arith.constant 0 : i32
    return %c0_i32, %c0_i32_0 : i32, i32
  }
  func.func @transform_4(%arg0: i32) -> (i32, i32) {
    %c0_i32 = arith.constant 0 : i32
    %c0_i32_0 = arith.constant 0 : i32
    %c0_i32_1 = arith.constant 0 : i32
    return %c0_i32, %c0_i32_0 : i32, i32
  }
  func.func @transform_5(%arg0: i32) -> (i32, i32) {
    %c0_i32 = arith.constant 0 : i32
    %c0_i32_0 = arith.constant 0 : i32
    %c0_i32_1 = arith.constant 0 : i32
    return %c0_i32, %c0_i32_0 : i32, i32
  }
  func.func @transform_6(%arg0: i32) -> (i32, i32) {
    %c0_i32 = arith.constant 0 : i32
    %c0_i32_0 = arith.constant 0 : i32
    %c0_i32_1 = arith.constant 0 : i32
    return %c0_i32, %c0_i32_0 : i32, i32
  }
  func.func @transform_7(%arg0: i32) -> (i32, i32) {
    %c0_i32 = arith.constant 0 : i32
    %c0_i32_0 = arith.constant 0 : i32
    return %arg0, %c0_i32 : i32, i32
  }
}

</mosaic_0001>

<bundles_post_ra>
// kernel: _lambda_.1
= control target key start
LH: loop header
LB: loop body
LE: loop exit
PB: predicated region body
PF: predicated region fallthrough
CT: control target
= control target key end

     0   :  { %12 = vsyncpa [#allocation8], 0  ;;  %s3231_s24 = smov [#allocation7]   ;;  %s3911_s0 = inlined_call_operand.vmem [shape: f32[64,28], index: 0, kind: input, shape index: {}]   ;;  %s3912_s1 = inlined_call_operand.vmem [shape: f32[28,128], index: 1, kind: input, shape index: {}]   ;;  %s3913_s2 = inlined_call_operand.vmem [shape: f32[32,128], index: 2, kind: input, shape index: {}]   ;;  %s3914_s3 = inlined_call_operand.vmem [shape: f32[1,128], index: 3, kind: input, shape index: {}]   ;;  %s3915_s4 = inlined_call_operand.vmem [shape: f32[32,128], index: 4, kind: input, shape index: {}]   ;;  %s3916_s5 = inlined_call_operand.hbm [shape: f32[32,128], index: 5, kind: input, shape index: {}]   ;;  %s3917_s6 = inlined_call_operand.vmem [shape: f32[1,128], index: 6, kind: input, shape index: {}]   ;;  %s3918_s7 = inlined_call_operand.vmem [shape: f32[64,32], index: 7, kind: output, shape index: {}]  }
   0x1   :  { %s28_s25 = sshll.u32 %s3231_s24, 4  ;;  %s29_s25 = int_to_ptr.vmem [resolvable:$true] %s28_s25 }
   0x2   :  { %s3217_s26 = scalar_lea.vmem %s29_s25, 512  ;;  %p3222_p1 = scmp.lt.s32.totalorder %s29_s25, %s29_s25 }
   0x3   :  { %p3218_p0 = scmp.ne.s32.totalorder %s29_s25, %s3217_s26  ;;  %p3223_p2 = scmp.lt.s32.totalorder %s3217_s26, %s3217_s26 }
   0x5   :  { %p3224_p3 = por %p3223_p2, %p3222_p1 }
   0x7   :  { %p3225_p4 = pnand %p3224_p3, %p3218_p0 }
   0x9   :  { %3228 = shalt.err (!%p3225_p4)
}
   0xa   :  { %s3232_s27 = smov 128   ;;  %s3233_s28 = smov 8  }
   0xb   :  { %34 = dma.hbm_to_vmem [thread:$0]  %s3916_s5, 512, %s29_s25, [#allocation8], %s3232_s27, %s3232_s27, %s3233_s28  }
   0xc   :  { %3229 = dma.done.wait [#allocation8], 512  }
   0xd   :  { %3230 = vsyncadd [#allocation8], 4294966784  ;;  %v3234_v0 = vmov 0.0   ;;  %vm3235_vm0 = vmmov 0   ;;  %vm44_vm1 = vcmask 261120   ;;  %vm93_vm2 = vcmask 1043456  }
   0xe   :  { %2827 = vmatprep.subr.mxu1 %v3234_v0  ;;  %2835 = vmatprep.mubr.msk.f32.mxu1 %vm3235_vm0, %v3234_v0  ;;  %45 = vst.msk [vmem:[#allocation2] sm:$0xff] %vm44_vm1, %v3234_v0  ;;  %46 = vst.msk [vmem:[#allocation3] sm:$0xff] %vm44_vm1, %v3234_v0  ;;  %v60_v1 = vld [vmem:[%s3912_s1 + $0x18] sm:$0xf]  ;;  %v59_v2 = vld [vmem:[%s3912_s1 + $0x10] sm:$0xff]  ;;  %vm68_vm3 = vcmask 228352  }
   0xf   :  { %47 = vst.msk [vmem:[#allocation4] sm:$0xff] %vm44_vm1, %v3234_v0  ;;  %48 = vst.msk [vmem:[#allocation5] sm:$0xff] %vm44_vm1, %v3234_v0  ;;  %v3302_v3 = vld [vmem:[%s3913_s2 + $0x18] sm:$0xff]  ;;  %2807 = vmatprep.subr.msk.mxu0 %vm93_vm2, %v60_v1  ;;  %v3308_v4 = vld [vmem:[%s3913_s2 + $0x10] sm:$0xff]  ;;  %s3236_s28 = smov 64   ;;  %s3237_s29 = smov 32  }
  0x10   :  { %2828 = vmatpush3.msra.mxu1 %v3302_v3  ;;  %2808 = vmatpush3.msk.msra.mxu0 %vm93_vm2, %v60_v1  ;;  %v58_v5 = vld [vmem:[%s3912_s1 + $0x8] sm:$0xff]  ;;  %v49_v6 = vld [vmem:[%s3911_s0] sm:$0xff]  ;;  %v3359_v31 = vld [vmem:[%s3915_s4 + $0x18] sm:$0xff] }
  0x11   :  { %2829 = vmatprep.subr.mxu1 %v3234_v0  ;;  %2809 = vmatprep.subr.mxu0 %v59_v2  ;;  %v3321_v7 = vld [vmem:[%s3913_s2 + $0x8] sm:$0xff]  ;;  %v57_v8 = vld [vmem:[%s3912_s1] sm:$0xff]  ;;  %v51_v32 = vld [vmem:[%s3911_s0 + $0x10] sm:$0xff] }
  0x12   :  { %2830 = vmatpush3.msra.mxu1 %v3308_v4  ;;  %2810 = vmatpush3.msra.mxu0 %v59_v2  ;;  %v3331_v9 = vld [vmem:[%s3913_s2] sm:$0xff]  ;;  %v50_v10 = vld [vmem:[%s3911_s0 + $0x8] sm:$0xff]  ;;  %v52_v33 = vld [vmem:[%s3911_s0 + $0x18] sm:$0xff] }
  0x13   :  { %2831 = vmatprep.subr.mxu1 %v3234_v0  ;;  %2811 = vmatprep.subr.mxu0 %v58_v5  ;;  %v3350_v14 = vld [vmem:[%s3914_s3] ss:$0 sm:$0xff]  ;;  %v3372_v34 = vld [vmem:[%s3915_s4 + $0x10] sm:$0xff]  ;;  %v3379_v36 = vld [vmem:[#allocation7 + $0x18] sm:$0xff] }
  0x14   :  { %2815 = vmatprep.mubr.msk.f32.mxu0 %vm68_vm3, %v49_v6  ;;  %2812 = vmatpush3.msra.mxu0 %v58_v5  ;;  %v53_v35 = vld [vmem:[%s3911_s0 + $0x20] sm:$0xff]  ;;  %v3384_v37 = vld [vmem:[%s3915_s4 + $0x8] sm:$0xff]  ;;  %v3391_v39 = vld [vmem:[#allocation7 + $0x10] sm:$0xff] }
  0x15   :  { %2832 = vmatpush3.msra.mxu1 %v3321_v7  ;;  %v229_v11 = vld [vmem:[#allocation2] sm:$0xff]  ;;  %2813 = vmatprep.subr.mxu0 %v57_v8  ;;  %v230_v20 = vld [vmem:[#allocation3] sm:$0xff]  ;;  %v55_v40 = vld [vmem:[%s3911_s0 + $0x30] sm:$0xff] }
  0x16   :  { %2833 = vmatprep.subr.mxu1 %v3234_v0  ;;  %2814 = vmatpush3.msra.mxu0 %v57_v8  ;;  %v54_v38 = vld [vmem:[%s3911_s0 + $0x28] sm:$0xff]  ;;  %v3407_v43 = vld [vmem:[%s3915_s4] sm:$0xff]  ;;  %v56_v44 = vld [vmem:[%s3911_s0 + $0x38] sm:$0xff]  ;;  %s3238_s0 = smov 96  }
  0x17   :  { %2834 = vmatpush3.msra.mxu1 %v3331_v9  ;;  %2816 = vmatmul.mubr.msk.f32.vlgmr.msra.gmra.mxu0 %vm68_vm3, %v50_v10  ;;  %v3402_v42 = vld [vmem:[#allocation7 + $0x8] sm:$0xff]  ;;  %v3416_v45 = vld [vmem:[#allocation7] sm:$0xff]  ;;  %v231_v46 = vld [vmem:[#allocation4] sm:$0xff] }
  0x18   :  { %2836 = vmatmul.mubr.msk.f32.vlgmr.msra.gmra.mxu1 %vm44_vm1, %v229_v11  ;;  %2849 = vmatprep.subr.mxu0 %v3234_v0  ;;  %v232_v49 = vld [vmem:[#allocation5] sm:$0xff]  ;;  %v3481_v62 = vld [vmem:[%s3917_s6] ss:$0 sm:$0xff] }
  0x19   :  { %2838 = vmatprep.subr.mxu1 %v3234_v0  ;;  %2846 = vmatprep.mubr.msk.f32.mxu1 %vm3235_vm0, %v3234_v0 }
  0x1a   :  { %2850 = vmatpush3.msra.mxu0 %v3359_v31  ;;  %2818 = vmatprep.mubr.msk.f32.mxu0 %vm68_vm3, %v51_v32 }
  0x1b   :  { %2819 = vmatmul.mubr.msk.f32.gmra.mxu0 %vm68_vm3, %v52_v33  ;;  %2851 = vmatprep.subr.mxu0 %v3234_v0 }
  0x1c   :  { %2852 = vmatpush3.msra.mxu0 %v3372_v34  ;;  %2821 = vmatprep.mubr.msk.f32.mxu0 %vm68_vm3, %v53_v35 }
  0x1d   :  { %2839 = vmatpush3.msra.mxu1 %v3379_v36  ;;  %2853 = vmatprep.subr.mxu0 %v3234_v0 }
  0x1e   :  { %2840 = vmatprep.subr.mxu1 %v3234_v0  ;;  %2854 = vmatpush3.msra.mxu0 %v3384_v37 }
  0x1f   :  { %2822 = vmatmul.mubr.msk.f32.gmra.mxu0 %vm68_vm3, %v54_v38  ;;  %2841 = vmatpush3.msra.mxu1 %v3391_v39 }
  0x20   :  { %2824 = vmatprep.mubr.msk.f32.mxu0 %vm68_vm3, %v55_v40  ;;  %2842 = vmatprep.subr.mxu1 %v3234_v0 }
  0x21   :  { %2855 = vmatprep.subr.mxu0 %v3234_v0  ;;  %2843 = vmatpush3.msra.mxu1 %v3402_v42 }
  0x22   :  { %2856 = vmatpush3.msra.mxu0 %v3407_v43  ;;  %2844 = vmatprep.subr.mxu1 %v3234_v0 }
  0x23   :  { %2825 = vmatmul.mubr.msk.f32.gmra.mxu0 %vm68_vm3, %v56_v44  ;;  %2845 = vmatpush3.msra.mxu1 %v3416_v45 }
  0x24   :  { %2857 = vmatprep.mubr.msk.f32.mxu0 %vm3235_vm0, %v3234_v0  ;;  %2847 = vmatmul.mubr.msk.f32.vlgmr.msra.gmra.mxu1 %vm44_vm1, %v231_v46 }
  0x25   :  { %2860 = vmatprep.subr.mxu1 %v3234_v0  ;;  %2868 = vmatprep.mubr.msk.f32.mxu1 %vm3235_vm0, %v3234_v0 }
  0x26   :  { %2861 = vmatpush3.msra.mxu1 %v3302_v3  ;;  %2871 = vmatprep.subr.mxu0 %v3234_v0 }
  0x27   :  { %2862 = vmatprep.subr.mxu1 %v3234_v0 }
  0x28   :  { %2863 = vmatpush3.msra.mxu1 %v3308_v4 }
  0x29   :  { %2864 = vmatprep.subr.mxu1 %v3234_v0 }
  0x2a   :  { %2865 = vmatpush3.msra.mxu1 %v3321_v7 }
  0x2b   :  { %2866 = vmatprep.subr.mxu1 %v3234_v0 }
  0x2c   :  { %2867 = vmatpush3.msra.mxu1 %v3331_v9 }
  0x2d   :  { %2882 = vmatprep.subr.mxu1 %v3234_v0 }
  0xd7   :  { %v3345_v12 = vpop.f32.mrf.mxu0 }
  0xd8   :  { %v304_v13 = vpop.f32.mrf.mxu1  ;;  %v169_v6 = vadd.f32 %v3345_v12, %v3350_v14 }
  0xd9   :  { %v163_v15 = vpop.f32.mrf.mxu0 }
  0xda   :  { %v2837_v16 = vpop.f32.mrf.mxu1  ;;  %v164_v17 = vadd.f32 %v3350_v14, %v163_v15 }
  0xdb   :  { %v3466_v56 = vpop.f32.mrf.mxu0 }
  0xdc   :  { %v308_v18 = vadd.f32 %v304_v13, %v164_v17 }
  0xdd   :  { %v3468_v57 = vpop.f32.mrf.mxu0 }
  0xde   :  { %3099 = vtanh.f32 %v308_v18  ;;  %v309_v21 = vmul.f32 0.5, %v308_v18 }
  0xdf   :  { %v3470_v58 = vpop.f32.mrf.mxu0 }
  0xe0   :  { %3101 = vtanh.f32 %v309_v21 }
  0xe1   :  { %v3472_v59 = vpop.f32.mrf.mxu0 }
  0xe3   :  { %v3474_v60 = vpop.f32.mrf.mxu0 }
  0xe4   :  { %v404_v50 = vpop.f32.mrf.mxu1 }
  0xe5   :  { %v3476_v61 = vpop.f32.mrf.mxu0 }
  0xe6   :  { %v2848_v52 = vpop.f32.mrf.mxu1 }
  0xeb   :  { %v3100_v19 = vpop.eup %3099 }
  0xec   :  { %320 = vrot.lane.b32.xlu0 %v3100_v19, %s3236_s28 }
  0xed   :  { %v3102_v22 = vpop.eup %3101 }
  0xee   :  { %v311_v23 = vmul.f32 0.5, %v3102_v22 }
  0xf0   :  { %315 = vrot.lane.b32.xlu0 %v230_v20, %s3237_s29  ;;  %v312_v24 = vadd.f32 0.5, %v311_v23 }
 0x15e   :  { %v321_v25 = vpop.permute.xlu0 %320 }
 0x15f   :  { %v323_v26 = vmul.f32 %v321_v25, %v312_v24 }
 0x161   :  { %325 = vrot.lane.b32.xlu1 %v323_v26, %s3237_s29 }
 0x162   :  { %v316_v27 = vpop.permute.xlu0 %315 }
 0x163   :  { %v318_v28 = vmul.f32 %v316_v27, %v312_v24 }
 0x1d3   :  { %v326_v29 = vpop.permute.xlu1 %325 }
 0x1d4   :  { %v328_v30 = vadd.f32 %v326_v29, %v318_v28 }
 0x1d6   :  { %3103 = vtanh.f32 %v328_v30 }
 0x1e3   :  { %v3104_v41 = vpop.eup %3103 }
 0x1e4   :  { %331 = vrot.lane.b32.xlu1 %v3104_v41, %s3236_s28 }
 0x256   :  { %v332_v47 = vpop.permute.xlu1 %331 }
 0x257   :  { %v334_v48 = vmul.f32 %v332_v47, %v312_v24 }
 0x259   :  { %409 = vrot.lane.b32.xlu0 %v334_v48, %s3237_s29 }
 0x25d   :  { %513 = vrot.lane.b32.xlu0 %v328_v30, %s3238_s0 }
 0x261   :  { %490 = vrot.lane.b32.xlu0 %v232_v49, %s3237_s29 }
 0x2cb   :  { %v410_v51 = vpop.permute.xlu0 %409 }
 0x2cc   :  { %511 = vst.msk [vmem:[#allocation2] sm:$0xff] %vm44_vm1, %v410_v51  ;;  %2858 = vmatmul.mubr.msk.f32.vlgmr.msra.gmra.mxu0 %vm44_vm1, %v410_v51 }
 0x2cd   :  { %2872 = vmatpush3.msra.mxu0 %v3379_v36  ;;  %2879 = vmatprep.mubr.msk.f32.mxu0 %vm3235_vm0, %v3234_v0 }
 0x2ce   :  { %2873 = vmatprep.subr.mxu0 %v3234_v0 }
 0x2cf   :  { %v514_v53 = vpop.permute.xlu0 %513  ;;  %2874 = vmatpush3.msra.mxu0 %v3391_v39 }
 0x2d0   :  { %516 = vst.msk [vmem:[#allocation3] sm:$0xff] %vm44_vm1, %v514_v53  ;;  %2875 = vmatprep.subr.mxu0 %v3234_v0 }
 0x2d1   :  { %2876 = vmatpush3.msra.mxu0 %v3402_v42 }
 0x2d2   :  { %2877 = vmatprep.subr.mxu0 %v3234_v0 }
 0x2d3   :  { %v528_v54 = vld [vmem:[#allocation2] sm:$0xff]  ;;  %2878 = vmatpush3.msra.mxu0 %v3416_v45  ;;  %v491_v27 = vpop.permute.xlu0 %490 }
 0x2d4   :  { %2869 = vmatmul.mubr.msk.f32.vlgmr.msra.gmra.mxu1 %vm44_vm1, %v528_v54  ;;  %2893 = vmatprep.subr.mxu0 %v3234_v0 }
 0x2d5   :  { %2883 = vmatpush3.msra.mxu1 %v3359_v31  ;;  %2890 = vmatprep.mubr.msk.f32.mxu1 %vm3235_vm0, %v3234_v0 }
 0x2d6   :  { %2884 = vmatprep.subr.mxu1 %v3234_v0 }
 0x2d7   :  { %v529_v55 = vld [vmem:[#allocation3] sm:$0xff]  ;;  %2885 = vmatpush3.msra.mxu1 %v3372_v34 }
 0x2d8   :  { %614 = vrot.lane.b32.xlu0 %v529_v55, %s3237_s29  ;;  %2886 = vmatprep.subr.mxu1 %v3234_v0 }
 0x2d9   :  { %2887 = vmatpush3.msra.mxu1 %v3384_v37 }
 0x2da   :  { %2888 = vmatprep.subr.mxu1 %v3234_v0 }
 0x2db   :  { %2889 = vmatpush3.msra.mxu1 %v3407_v43 }
 0x2dc   :  { %2904 = vmatprep.subr.mxu1 %v3234_v0 }
 0x34a   :  { %v615_v32 = vpop.permute.xlu0 %614 }
 0x38c   :  { %v479_v63 = vpop.f32.mrf.mxu0 }
 0x38d   :  { %v480_v1 = vadd.f32 %v479_v63, %v404_v50 }
 0x38e   :  { %v2859_v2 = vpop.f32.mrf.mxu0 }
 0x38f   :  { %v483_v5 = vadd.f32 %v3481_v62, %v480_v1 }
 0x391   :  { %3105 = vtanh.f32 %v483_v5  ;;  %v484_v16 = vmul.f32 0.5, %v483_v5 }
 0x394   :  { %v603_v8 = vpop.f32.mrf.mxu1 }
 0x395   :  { %v607_v10 = vadd.f32 %v603_v8, %v169_v6 }
 0x396   :  { %v2870_v11 = vpop.f32.mrf.mxu1 }
 0x397   :  { %3107 = vtanh.f32 %v607_v10  ;;  %v608_v17 = vmul.f32 0.5, %v607_v10  ;;  %v174_v11 = vadd.f32 %v3350_v14, %v3468_v57 }
 0x398   :  { %3109 = vtanh.f32 %v484_v16 }
 0x399   :  { %3111 = vtanh.f32 %v608_v17 }
 0x39e   :  { %v3106_v13 = vpop.eup %3105 }
 0x39f   :  { %495 = vrot.lane.b32.xlu1 %v3106_v13, %s3236_s28 }
 0x3a4   :  { %v3108_v15 = vpop.eup %3107 }
 0x3a5   :  { %619 = vrot.lane.b32.xlu1 %v3108_v15, %s3236_s28  ;;  %v3110_v18 = vpop.eup %3109 }
 0x3a6   :  { %v486_v19 = vmul.f32 0.5, %v3110_v18  ;;  %v3112_v20 = vpop.eup %3111 }
 0x3a7   :  { %v610_v23 = vmul.f32 0.5, %v3112_v20 }
 0x3a8   :  { %v487_v21 = vadd.f32 0.5, %v486_v19 }
 0x3a9   :  { %v611_v24 = vadd.f32 0.5, %v610_v23 }
 0x3aa   :  { %v493_v28 = vmul.f32 %v491_v27, %v487_v21 }
 0x3ab   :  { %v617_v33 = vmul.f32 %v615_v32, %v611_v24 }
 0x411   :  { %v496_v22 = vpop.permute.xlu1 %495 }
 0x412   :  { %v498_v12 = vmul.f32 %v496_v22, %v487_v21 }
 0x414   :  { %500 = vrot.lane.b32.xlu1 %v498_v12, %s3237_s29 }
 0x417   :  { %v620_v25 = vpop.permute.xlu1 %619 }
 0x418   :  { %v622_v26 = vmul.f32 %v620_v25, %v611_v24 }
 0x41a   :  { %624 = vrot.lane.b32.xlu1 %v622_v26, %s3237_s29 }
 0x486   :  { %v501_v29 = vpop.permute.xlu1 %500 }
 0x487   :  { %v503_v30 = vadd.f32 %v501_v29, %v493_v28 }
 0x489   :  { %3113 = vtanh.f32 %v503_v30 }
 0x48c   :  { %v625_v35 = vpop.permute.xlu1 %624 }
 0x48d   :  { %v627_v38 = vadd.f32 %v625_v35, %v617_v33 }
 0x48f   :  { %3115 = vtanh.f32 %v627_v38 }
 0x496   :  { %v3114_v40 = vpop.eup %3113 }
 0x497   :  { %506 = vrot.lane.b32.xlu0 %v3114_v40, %s3236_s28 }
 0x49c   :  { %v3116_v41 = vpop.eup %3115 }
 0x49d   :  { %630 = vrot.lane.b32.xlu1 %v3116_v41, %s3236_s28 }
 0x509   :  { %v507_v44 = vpop.permute.xlu0 %506 }
 0x50a   :  { %v509_v46 = vmul.f32 %v507_v44, %v487_v21 }
 0x50c   :  { %518 = vrot.lane.b32.xlu0 %v509_v46, %s3237_s29 }
 0x50f   :  { %v631_v47 = vpop.permute.xlu1 %630 }
 0x510   :  { %v633_v48 = vmul.f32 %v631_v47, %v611_v24  ;;  %523 = vrot.lane.b32.xlu0 %v503_v30, %s3238_s0 }
 0x512   :  { %708 = vrot.lane.b32.xlu1 %v633_v48, %s3237_s29 }
 0x514   :  { %812 = vrot.lane.b32.xlu0 %v627_v38, %s3238_s0 }
 0x57e   :  { %v519_v49 = vpop.permute.xlu0 %518 }
 0x57f   :  { %521 = vst.msk [vmem:[#allocation4] sm:$0xff] %vm44_vm1, %v519_v49  ;;  %527 = vst.msk [vmem:[%s3918_s7] sm:$0xff] %vm44_vm1, %v519_v49 }
 0x582   :  { %v524_v50 = vpop.permute.xlu0 %523 }
 0x583   :  { %526 = vst.msk [vmem:[#allocation5] sm:$0xff] %vm44_vm1, %v524_v50 }
 0x584   :  { %v709_v51 = vpop.permute.xlu1 %708 }
 0x585   :  { %810 = vst.msk [vmem:[#allocation2] sm:$0xff] %vm44_vm1, %v709_v51  ;;  %2891 = vmatmul.mubr.msk.f32.vlgmr.msra.gmra.mxu1 %vm44_vm1, %v709_v51 }
 0x586   :  { %v813_v52 = vpop.permute.xlu0 %812  ;;  %v530_v53 = vld [vmem:[#allocation4] sm:$0xff]  ;;  %2905 = vmatpush3.msra.mxu1 %v3379_v36  ;;  %2912 = vmatprep.mubr.msk.f32.mxu1 %vm3235_vm0, %v3234_v0 }
 0x587   :  { %815 = vst.msk [vmem:[#allocation3] sm:$0xff] %vm44_vm1, %v813_v52  ;;  %2880 = vmatmul.mubr.msk.f32.vlgmr.msra.gmra.mxu0 %vm44_vm1, %v530_v53  ;;  %2906 = vmatprep.subr.mxu1 %v3234_v0 }
 0x588   :  { %2894 = vmatpush3.msra.mxu0 %v3302_v3  ;;  %2901 = vmatprep.mubr.msk.f32.mxu0 %vm3235_vm0, %v3234_v0 }
 0x589   :  { %2895 = vmatprep.subr.mxu0 %v3234_v0  ;;  %2907 = vmatpush3.msra.mxu1 %v3391_v39 }
 0x58a   :  { %2896 = vmatpush3.msra.mxu0 %v3308_v4  ;;  %v531_v54 = vld [vmem:[#allocation5] sm:$0xff]  ;;  %2908 = vmatprep.subr.mxu1 %v3234_v0 }
 0x58b   :  { %2897 = vmatprep.subr.mxu0 %v3234_v0  ;;  %789 = vrot.lane.b32.xlu0 %v531_v54, %s3237_s29 }
 0x58c   :  { %2898 = vmatpush3.msra.mxu0 %v3321_v7  ;;  %v828_v55 = vld [vmem:[#allocation2] sm:$0xff]  ;;  %2909 = vmatpush3.msra.mxu1 %v3402_v42 }
 0x58d   :  { %2899 = vmatprep.subr.mxu0 %v3234_v0  ;;  %2910 = vmatprep.subr.mxu1 %v3234_v0 }
 0x58e   :  { %2900 = vmatpush3.msra.mxu0 %v3331_v9  ;;  %v829_v63 = vld [vmem:[#allocation3] sm:$0xff]  ;;  %2911 = vmatpush3.msra.mxu1 %v3416_v45 }
 0x58f   :  { %2902 = vmatmul.mubr.msk.f32.vlgmr.msra.gmra.mxu0 %vm44_vm1, %v828_v55  ;;  %914 = vrot.lane.b32.xlu0 %v829_v63, %s3237_s29 }
 0x590   :  { %2915 = vmatprep.subr.mxu0 %v3234_v0  ;;  %2923 = vmatprep.mubr.msk.f32.mxu0 %vm3235_vm0, %v3234_v0 }
 0x591   :  { %2916 = vmatpush3.msra.mxu0 %v3359_v31  ;;  %2926 = vmatprep.subr.mxu1 %v3234_v0 }
 0x592   :  { %2917 = vmatprep.subr.mxu0 %v3234_v0 }
 0x593   :  { %2918 = vmatpush3.msra.mxu0 %v3372_v34 }
 0x594   :  { %2919 = vmatprep.subr.mxu0 %v3234_v0 }
 0x595   :  { %2920 = vmatpush3.msra.mxu0 %v3384_v37 }
 0x596   :  { %2921 = vmatprep.subr.mxu0 %v3234_v0 }
 0x597   :  { %2922 = vmatpush3.msra.mxu0 %v3407_v43 }
 0x598   :  { %2937 = vmatprep.subr.mxu0 %v3234_v0 }
 0x5fd   :  { %v790_v29 = vpop.permute.xlu0 %789 }
 0x601   :  { %v915_v35 = vpop.permute.xlu0 %914 }
 0x645   :  { %v778_v1 = vpop.f32.mrf.mxu1 }
 0x647   :  { %v703_v2 = vpop.f32.mrf.mxu0  ;;  %v2892_v5 = vpop.f32.mrf.mxu1 }
 0x648   :  { %v779_v6 = vadd.f32 %v778_v1, %v703_v2 }
 0x649   :  { %v2881_v8 = vpop.f32.mrf.mxu0 }
 0x64a   :  { %v782_v10 = vadd.f32 %v3481_v62, %v779_v6 }
 0x64c   :  { %3117 = vtanh.f32 %v782_v10  ;;  %v783_v19 = vmul.f32 0.5, %v782_v10 }
 0x64f   :  { %v903_v13 = vpop.f32.mrf.mxu0 }
 0x650   :  { %v907_v15 = vadd.f32 %v903_v13, %v174_v11 }
 0x651   :  { %v2903_v16 = vpop.f32.mrf.mxu0 }
 0x652   :  { %3119 = vtanh.f32 %v907_v15  ;;  %v908_v20 = vmul.f32 0.5, %v907_v15  ;;  %v179_v15 = vadd.f32 %v3466_v56, %v3350_v14 }
 0x653   :  { %3121 = vtanh.f32 %v783_v19 }
 0x654   :  { %3123 = vtanh.f32 %v908_v20 }
 0x659   :  { %v3118_v17 = vpop.eup %3117 }
 0x65a   :  { %794 = vrot.lane.b32.xlu1 %v3118_v17, %s3236_s28 }
 0x65f   :  { %v3120_v18 = vpop.eup %3119 }
 0x660   :  { %919 = vrot.lane.b32.xlu1 %v3120_v18, %s3236_s28  ;;  %v3122_v21 = vpop.eup %3121 }
 0x661   :  { %v785_v22 = vmul.f32 0.5, %v3122_v21  ;;  %v3124_v12 = vpop.eup %3123 }
 0x662   :  { %v910_v25 = vmul.f32 0.5, %v3124_v12 }
 0x663   :  { %v786_v23 = vadd.f32 0.5, %v785_v22 }
 0x664   :  { %v911_v26 = vadd.f32 0.5, %v910_v25 }
 0x665   :  { %v792_v30 = vmul.f32 %v790_v29, %v786_v23 }
 0x666   :  { %v917_v38 = vmul.f32 %v915_v35, %v911_v26 }
 0x6cc   :  { %v795_v24 = vpop.permute.xlu1 %794 }
 0x6cd   :  { %v797_v57 = vmul.f32 %v795_v24, %v786_v23 }
 0x6cf   :  { %799 = vrot.lane.b32.xlu1 %v797_v57, %s3237_s29 }
 0x6d2   :  { %v920_v27 = vpop.permute.xlu1 %919 }
 0x6d3   :  { %v922_v28 = vmul.f32 %v920_v27, %v911_v26 }
 0x6d5   :  { %924 = vrot.lane.b32.xlu1 %v922_v28, %s3237_s29 }
 0x741   :  { %v800_v32 = vpop.permute.xlu1 %799 }
 0x742   :  { %v802_v33 = vadd.f32 %v800_v32, %v792_v30 }
 0x744   :  { %3125 = vtanh.f32 %v802_v33 }
 0x747   :  { %v925_v40 = vpop.permute.xlu1 %924 }
 0x748   :  { %v927_v41 = vadd.f32 %v925_v40, %v917_v38 }
 0x74a   :  { %3127 = vtanh.f32 %v927_v41 }
 0x751   :  { %v3126_v44 = vpop.eup %3125 }
 0x752   :  { %805 = vrot.lane.b32.xlu0 %v3126_v44, %s3236_s28 }
 0x757   :  { %v3128_v46 = vpop.eup %3127 }
 0x758   :  { %930 = vrot.lane.b32.xlu1 %v3128_v46, %s3236_s28 }
 0x7c4   :  { %v806_v47 = vpop.permute.xlu0 %805 }
 0x7c5   :  { %v808_v48 = vmul.f32 %v806_v47, %v786_v23 }
 0x7c7   :  { %817 = vrot.lane.b32.xlu0 %v808_v48, %s3237_s29 }
 0x7ca   :  { %v931_v49 = vpop.permute.xlu1 %930 }
 0x7cb   :  { %v933_v50 = vmul.f32 %v931_v49, %v911_v26  ;;  %822 = vrot.lane.b32.xlu0 %v802_v33, %s3238_s0 }
 0x7cd   :  { %1008 = vrot.lane.b32.xlu1 %v933_v50, %s3237_s29 }
 0x7cf   :  { %1112 = vrot.lane.b32.xlu0 %v927_v41, %s3238_s0 }
 0x839   :  { %v818_v51 = vpop.permute.xlu0 %817 }
 0x83a   :  { %820 = vst.msk [vmem:[#allocation4] sm:$0xff] %vm44_vm1, %v818_v51  ;;  %2650 = vst.msk [vmem:[%s3918_s7 + $0x8] sm:$0xff] %vm44_vm1, %v818_v51 }
 0x83d   :  { %v823_v52 = vpop.permute.xlu0 %822 }
 0x83e   :  { %825 = vst.msk [vmem:[#allocation5] sm:$0xff] %vm44_vm1, %v823_v52 }
 0x83f   :  { %v1009_v53 = vpop.permute.xlu1 %1008 }
 0x840   :  { %1110 = vst.msk [vmem:[#allocation2] sm:$0xff] %vm44_vm1, %v1009_v53  ;;  %2924 = vmatmul.mubr.msk.f32.vlgmr.msra.gmra.mxu0 %vm44_vm1, %v1009_v53 }
 0x841   :  { %v1113_v54 = vpop.permute.xlu0 %1112  ;;  %v830_v55 = vld [vmem:[#allocation4] sm:$0xff]  ;;  %2938 = vmatpush3.msra.mxu0 %v3379_v36  ;;  %2945 = vmatprep.mubr.msk.f32.mxu0 %vm3235_vm0, %v3234_v0 }
 0x842   :  { %1115 = vst.msk [vmem:[#allocation3] sm:$0xff] %vm44_vm1, %v1113_v54  ;;  %2913 = vmatmul.mubr.msk.f32.vlgmr.msra.gmra.mxu1 %vm44_vm1, %v830_v55  ;;  %2939 = vmatprep.subr.mxu0 %v3234_v0 }
 0x843   :  { %2927 = vmatpush3.msra.mxu1 %v3302_v3  ;;  %2934 = vmatprep.mubr.msk.f32.mxu1 %vm3235_vm0, %v3234_v0 }
 0x844   :  { %2928 = vmatprep.subr.mxu1 %v3234_v0  ;;  %2940 = vmatpush3.msra.mxu0 %v3391_v39 }
 0x845   :  { %2929 = vmatpush3.msra.mxu1 %v3308_v4  ;;  %v831_v63 = vld [vmem:[#allocation5] sm:$0xff]  ;;  %2941 = vmatprep.subr.mxu0 %v3234_v0 }
 0x846   :  { %2930 = vmatprep.subr.mxu1 %v3234_v0  ;;  %1089 = vrot.lane.b32.xlu0 %v831_v63, %s3237_s29 }
 0x847   :  { %2931 = vmatpush3.msra.mxu1 %v3321_v7  ;;  %2942 = vmatpush3.msra.mxu0 %v3402_v42  ;;  %v1128_v1 = vld [vmem:[#allocation2] sm:$0xff] }
 0x848   :  { %2932 = vmatprep.subr.mxu1 %v3234_v0  ;;  %2943 = vmatprep.subr.mxu0 %v3234_v0 }
 0x849   :  { %2933 = vmatpush3.msra.mxu1 %v3331_v9  ;;  %v1129_v2 = vld [vmem:[#allocation3] sm:$0xff]  ;;  %2944 = vmatpush3.msra.mxu0 %v3416_v45 }
 0x84a   :  { %2935 = vmatmul.mubr.msk.f32.vlgmr.msra.gmra.mxu1 %vm44_vm1, %v1128_v1  ;;  %1214 = vrot.lane.b32.xlu0 %v1129_v2, %s3237_s29 }
 0x84b   :  { %2948 = vmatprep.subr.mxu1 %v3234_v0  ;;  %2956 = vmatprep.mubr.msk.f32.mxu1 %vm3235_vm0, %v3234_v0 }
 0x84c   :  { %2949 = vmatpush3.msra.mxu1 %v3359_v31  ;;  %2959 = vmatprep.subr.mxu0 %v3234_v0 }
 0x84d   :  { %2950 = vmatprep.subr.mxu1 %v3234_v0 }
 0x84e   :  { %2951 = vmatpush3.msra.mxu1 %v3372_v34 }
 0x84f   :  { %2952 = vmatprep.subr.mxu1 %v3234_v0 }
 0x850   :  { %2953 = vmatpush3.msra.mxu1 %v3384_v37 }
 0x851   :  { %2954 = vmatprep.subr.mxu1 %v3234_v0 }
 0x852   :  { %2955 = vmatpush3.msra.mxu1 %v3407_v43 }
 0x853   :  { %2970 = vmatprep.subr.mxu1 %v3234_v0 }
 0x8b8   :  { %v1090_v30 = vpop.permute.xlu0 %1089 }
 0x8bc   :  { %v1215_v38 = vpop.permute.xlu0 %1214 }
 0x900   :  { %v1078_v5 = vpop.f32.mrf.mxu0 }
 0x902   :  { %v2925_v6 = vpop.f32.mrf.mxu0  ;;  %v1003_v8 = vpop.f32.mrf.mxu1 }
 0x903   :  { %v1079_v10 = vadd.f32 %v1078_v5, %v1003_v8 }
 0x904   :  { %v2914_v11 = vpop.f32.mrf.mxu1 }
 0x905   :  { %v1082_v13 = vadd.f32 %v3481_v62, %v1079_v10  ;;  %v184_v11 = vadd.f32 %v3350_v14, %v3472_v59 }
 0x907   :  { %3129 = vtanh.f32 %v1082_v13  ;;  %v1083_v21 = vmul.f32 0.5, %v1082_v13 }
 0x90a   :  { %v1203_v16 = vpop.f32.mrf.mxu1 }
 0x90b   :  { %v1207_v17 = vadd.f32 %v1203_v16, %v179_v15 }
 0x90c   :  { %v2936_v18 = vpop.f32.mrf.mxu1 }
 0x90d   :  { %3131 = vtanh.f32 %v1207_v17  ;;  %v1208_v22 = vmul.f32 0.5, %v1207_v17 }
 0x90e   :  { %3133 = vtanh.f32 %v1083_v21 }
 0x90f   :  { %3135 = vtanh.f32 %v1208_v22 }
 0x914   :  { %v3130_v19 = vpop.eup %3129 }
 0x915   :  { %1094 = vrot.lane.b32.xlu1 %v3130_v19, %s3236_s28 }
 0x91a   :  { %v3132_v20 = vpop.eup %3131 }
 0x91b   :  { %1219 = vrot.lane.b32.xlu1 %v3132_v20, %s3236_s28  ;;  %v3134_v12 = vpop.eup %3133 }
 0x91c   :  { %v1085_v23 = vmul.f32 0.5, %v3134_v12  ;;  %v3136_v24 = vpop.eup %3135 }
 0x91d   :  { %v1210_v26 = vmul.f32 0.5, %v3136_v24 }
 0x91e   :  { %v1086_v57 = vadd.f32 0.5, %v1085_v23 }
 0x91f   :  { %v1211_v27 = vadd.f32 0.5, %v1210_v26 }
 0x920   :  { %v1092_v32 = vmul.f32 %v1090_v30, %v1086_v57 }
 0x921   :  { %v1217_v40 = vmul.f32 %v1215_v38, %v1211_v27 }
 0x987   :  { %v1095_v25 = vpop.permute.xlu1 %1094 }
 0x988   :  { %v1097_v56 = vmul.f32 %v1095_v25, %v1086_v57 }
 0x98a   :  { %1099 = vrot.lane.b32.xlu1 %v1097_v56, %s3237_s29 }
 0x98d   :  { %v1220_v28 = vpop.permute.xlu1 %1219 }
 0x98e   :  { %v1222_v29 = vmul.f32 %v1220_v28, %v1211_v27 }
 0x990   :  { %1224 = vrot.lane.b32.xlu1 %v1222_v29, %s3237_s29 }
 0x9fc   :  { %v1100_v33 = vpop.permute.xlu1 %1099 }
 0x9fd   :  { %v1102_v35 = vadd.f32 %v1100_v33, %v1092_v32 }
 0x9ff   :  { %3137 = vtanh.f32 %v1102_v35 }
 0xa02   :  { %v1225_v41 = vpop.permute.xlu1 %1224 }
 0xa03   :  { %v1227_v44 = vadd.f32 %v1225_v41, %v1217_v40 }
 0xa05   :  { %3139 = vtanh.f32 %v1227_v44 }
 0xa0c   :  { %v3138_v46 = vpop.eup %3137 }
 0xa0d   :  { %1105 = vrot.lane.b32.xlu0 %v3138_v46, %s3236_s28 }
 0xa12   :  { %v3140_v47 = vpop.eup %3139 }
 0xa13   :  { %1230 = vrot.lane.b32.xlu1 %v3140_v47, %s3236_s28 }
 0xa7f   :  { %v1106_v48 = vpop.permute.xlu0 %1105 }
 0xa80   :  { %v1108_v49 = vmul.f32 %v1106_v48, %v1086_v57 }
 0xa82   :  { %1117 = vrot.lane.b32.xlu0 %v1108_v49, %s3237_s29 }
 0xa85   :  { %v1231_v50 = vpop.permute.xlu1 %1230 }
 0xa86   :  { %v1233_v51 = vmul.f32 %v1231_v50, %v1211_v27  ;;  %1122 = vrot.lane.b32.xlu0 %v1102_v35, %s3238_s0 }
 0xa88   :  { %1308 = vrot.lane.b32.xlu1 %v1233_v51, %s3237_s29 }
 0xa8a   :  { %1412 = vrot.lane.b32.xlu0 %v1227_v44, %s3238_s0 }
 0xaf4   :  { %v1118_v52 = vpop.permute.xlu0 %1117 }
 0xaf5   :  { %1120 = vst.msk [vmem:[#allocation4] sm:$0xff] %vm44_vm1, %v1118_v52  ;;  %2654 = vst.msk [vmem:[%s3918_s7 + $0x10] sm:$0xff] %vm44_vm1, %v1118_v52 }
 0xaf8   :  { %v1123_v53 = vpop.permute.xlu0 %1122 }
 0xaf9   :  { %1125 = vst.msk [vmem:[#allocation5] sm:$0xff] %vm44_vm1, %v1123_v53  ;;  %v3681_v53 = vld [vmem:[%s3913_s2 + $0x18] sm:$0xff] }
 0xafa   :  { %v1309_v54 = vpop.permute.xlu1 %1308 }
 0xafb   :  { %1410 = vst.msk [vmem:[#allocation2] sm:$0xff] %vm44_vm1, %v1309_v54  ;;  %2957 = vmatmul.mubr.msk.f32.vlgmr.msra.gmra.mxu1 %vm44_vm1, %v1309_v54 }
 0xafc   :  { %v1413_v55 = vpop.permute.xlu0 %1412  ;;  %v1130_v63 = vld [vmem:[#allocation4] sm:$0xff]  ;;  %2971 = vmatpush3.msra.mxu1 %v3379_v36  ;;  %2978 = vmatprep.mubr.msk.f32.mxu1 %vm3235_vm0, %v3234_v0 }
 0xafd   :  { %1415 = vst.msk [vmem:[#allocation3] sm:$0xff] %vm44_vm1, %v1413_v55  ;;  %2946 = vmatmul.mubr.msk.f32.vlgmr.msra.gmra.mxu0 %vm44_vm1, %v1130_v63  ;;  %2972 = vmatprep.subr.mxu1 %v3234_v0  ;;  %v3700_v55 = vld [vmem:[%s3913_s2 + $0x8] sm:$0xff] }
 0xafe   :  { %2960 = vmatpush3.msra.mxu0 %v3302_v3  ;;  %2967 = vmatprep.mubr.msk.f32.mxu0 %vm3235_vm0, %v3234_v0 }
 0xaff   :  { %2961 = vmatprep.subr.mxu0 %v3234_v0  ;;  %2973 = vmatpush3.msra.mxu1 %v3391_v39 }
 0xb00   :  { %2962 = vmatpush3.msra.mxu0 %v3308_v4  ;;  %v1131_v1 = vld [vmem:[#allocation5] sm:$0xff]  ;;  %2974 = vmatprep.subr.mxu1 %v3234_v0 }
 0xb01   :  { %2963 = vmatprep.subr.mxu0 %v3234_v0  ;;  %1389 = vrot.lane.b32.xlu0 %v1131_v1, %s3237_s29 }
 0xb02   :  { %2964 = vmatpush3.msra.mxu0 %v3321_v7  ;;  %2975 = vmatpush3.msra.mxu1 %v3402_v42  ;;  %v1428_v3 = vld [vmem:[#allocation2] sm:$0xff] }
 0xb03   :  { %2965 = vmatprep.subr.mxu0 %v3234_v0  ;;  %2976 = vmatprep.subr.mxu1 %v3234_v0 }
 0xb04   :  { %2966 = vmatpush3.msra.mxu0 %v3331_v9  ;;  %v1429_v2 = vld [vmem:[#allocation3] sm:$0xff]  ;;  %2977 = vmatpush3.msra.mxu1 %v3416_v45 }
 0xb05   :  { %2968 = vmatmul.mubr.msk.f32.vlgmr.msra.gmra.mxu0 %vm44_vm1, %v1428_v3  ;;  %1514 = vrot.lane.b32.xlu0 %v1429_v2, %s3237_s29 }
 0xb06   :  { %2981 = vmatprep.subr.mxu0 %v3234_v0  ;;  %2989 = vmatprep.mubr.msk.f32.mxu0 %vm3235_vm0, %v3234_v0 }
 0xb07   :  { %2982 = vmatpush3.msra.mxu0 %v3359_v31  ;;  %2992 = vmatprep.subr.mxu1 %v3234_v0 }
 0xb08   :  { %2983 = vmatprep.subr.mxu0 %v3234_v0 }
 0xb09   :  { %2984 = vmatpush3.msra.mxu0 %v3372_v34 }
 0xb0a   :  { %2985 = vmatprep.subr.mxu0 %v3234_v0 }
 0xb0b   :  { %2986 = vmatpush3.msra.mxu0 %v3384_v37 }
 0xb0c   :  { %2987 = vmatprep.subr.mxu0 %v3234_v0 }
 0xb0d   :  { %2988 = vmatpush3.msra.mxu0 %v3407_v43 }
 0xb0e   :  { %3003 = vmatprep.subr.mxu0 %v3234_v0 }
 0xb73   :  { %v1390_v26 = vpop.permute.xlu0 %1389 }
 0xb77   :  { %v1515_v30 = vpop.permute.xlu0 %1514 }
 0xbbb   :  { %v1378_v4 = vpop.f32.mrf.mxu1 }
 0xbbd   :  { %v2958_v7 = vpop.f32.mrf.mxu1  ;;  %v1303_v5 = vpop.f32.mrf.mxu0 }
 0xbbe   :  { %v1379_v6 = vadd.f32 %v1378_v4, %v1303_v5 }
 0xbbf   :  { %v2947_v8 = vpop.f32.mrf.mxu0 }
 0xbc0   :  { %v1382_v10 = vadd.f32 %v3481_v62, %v1379_v6 }
 0xbc2   :  { %3141 = vtanh.f32 %v1382_v10  ;;  %v1383_v19 = vmul.f32 0.5, %v1382_v10 }
 0xbc5   :  { %v1503_v13 = vpop.f32.mrf.mxu0 }
 0xbc6   :  { %v1507_v15 = vadd.f32 %v1503_v13, %v184_v11 }
 0xbc7   :  { %v2969_v16 = vpop.f32.mrf.mxu0 }
 0xbc8   :  { %3143 = vtanh.f32 %v1507_v15  ;;  %v1508_v20 = vmul.f32 0.5, %v1507_v15 }
 0xbc9   :  { %3145 = vtanh.f32 %v1383_v19 }
 0xbca   :  { %3147 = vtanh.f32 %v1508_v20 }
 0xbcf   :  { %v3142_v17 = vpop.eup %3141 }
 0xbd0   :  { %1394 = vrot.lane.b32.xlu1 %v3142_v17, %s3236_s28 }
 0xbd5   :  { %v3144_v18 = vpop.eup %3143 }
 0xbd6   :  { %1519 = vrot.lane.b32.xlu1 %v3144_v18, %s3236_s28  ;;  %v3146_v21 = vpop.eup %3145 }
 0xbd7   :  { %v1385_v22 = vmul.f32 0.5, %v3146_v21  ;;  %v3148_v12 = vpop.eup %3147 }
 0xbd8   :  { %v1510_v59 = vmul.f32 0.5, %v3148_v12 }
 0xbd9   :  { %v1386_v23 = vadd.f32 0.5, %v1385_v22 }
 0xbda   :  { %v1511_v57 = vadd.f32 0.5, %v1510_v59 }
 0xbdb   :  { %v1392_v27 = vmul.f32 %v1390_v26, %v1386_v23 }
 0xbdc   :  { %v1517_v32 = vmul.f32 %v1515_v30, %v1511_v57 }
 0xc42   :  { %v1395_v24 = vpop.permute.xlu1 %1394 }
 0xc43   :  { %v1397_v14 = vmul.f32 %v1395_v24, %v1386_v23 }
 0xc45   :  { %1399 = vrot.lane.b32.xlu1 %v1397_v14, %s3237_s29 }
 0xc48   :  { %v1520_v25 = vpop.permute.xlu1 %1519 }
 0xc49   :  { %v1522_v56 = vmul.f32 %v1520_v25, %v1511_v57 }
 0xc4b   :  { %1524 = vrot.lane.b32.xlu1 %v1522_v56, %s3237_s29 }
 0xcb7   :  { %v1400_v28 = vpop.permute.xlu1 %1399 }
 0xcb8   :  { %v1402_v29 = vadd.f32 %v1400_v28, %v1392_v27 }
 0xcba   :  { %3149 = vtanh.f32 %v1402_v29 }
 0xcbd   :  { %v1525_v33 = vpop.permute.xlu1 %1524 }
 0xcbe   :  { %v1527_v35 = vadd.f32 %v1525_v33, %v1517_v32 }
 0xcc0   :  { %3151 = vtanh.f32 %v1527_v35 }
 0xcc7   :  { %v3150_v38 = vpop.eup %3149 }
 0xcc8   :  { %1405 = vrot.lane.b32.xlu0 %v3150_v38, %s3236_s28 }
 0xccd   :  { %v3152_v40 = vpop.eup %3151 }
 0xcce   :  { %1530 = vrot.lane.b32.xlu1 %v3152_v40, %s3236_s28  ;;  %v3748_v40 = vld [vmem:[#allocation7 + $0x18] sm:$0xff] }
 0xd3a   :  { %v1406_v41 = vpop.permute.xlu0 %1405 }
 0xd3b   :  { %v1408_v44 = vmul.f32 %v1406_v41, %v1386_v23  ;;  %v3760_v41 = vld [vmem:[#allocation7 + $0x10] sm:$0xff] }
 0xd3d   :  { %1417 = vrot.lane.b32.xlu0 %v1408_v44, %s3237_s29 }
 0xd40   :  { %v1531_v46 = vpop.permute.xlu1 %1530 }
 0xd41   :  { %v1533_v47 = vmul.f32 %v1531_v46, %v1511_v57  ;;  %1422 = vrot.lane.b32.xlu0 %v1402_v29, %s3238_s0  ;;  %v3768_v46 = vld [vmem:[#allocation7 + $0x8] sm:$0xff] }
 0xd43   :  { %1608 = vrot.lane.b32.xlu1 %v1533_v47, %s3237_s29  ;;  %v3776_v47 = vld [vmem:[%s3913_s2] sm:$0xff] }
 0xd45   :  { %1712 = vrot.lane.b32.xlu0 %v1527_v35, %s3238_s0 }
 0xdaf   :  { %v1418_v48 = vpop.permute.xlu0 %1417 }
 0xdb0   :  { %1420 = vst.msk [vmem:[#allocation4] sm:$0xff] %vm44_vm1, %v1418_v48  ;;  %2658 = vst.msk [vmem:[%s3918_s7 + $0x18] sm:$0xff] %vm44_vm1, %v1418_v48 }
 0xdb3   :  { %v1423_v49 = vpop.permute.xlu0 %1422 }
 0xdb4   :  { %1425 = vst.msk [vmem:[#allocation5] sm:$0xff] %vm44_vm1, %v1423_v49 }
 0xdb5   :  { %v1609_v50 = vpop.permute.xlu1 %1608 }
 0xdb6   :  { %1710 = vst.msk [vmem:[#allocation2] sm:$0xff] %vm44_vm1, %v1609_v50  ;;  %2990 = vmatmul.mubr.msk.f32.vlgmr.msra.gmra.mxu0 %vm44_vm1, %v1609_v50  ;;  %v3779_v50 = vld [vmem:[#allocation7] sm:$0xff] }
 0xdb7   :  { %v1713_v51 = vpop.permute.xlu0 %1712  ;;  %v1430_v52 = vld [vmem:[#allocation4] sm:$0xff]  ;;  %3004 = vmatpush3.msra.mxu0 %v3379_v36  ;;  %3011 = vmatprep.mubr.msk.f32.mxu0 %vm3235_vm0, %v3234_v0 }
 0xdb8   :  { %1715 = vst.msk [vmem:[#allocation3] sm:$0xff] %vm44_vm1, %v1713_v51  ;;  %2979 = vmatmul.mubr.msk.f32.vlgmr.msra.gmra.mxu1 %vm44_vm1, %v1430_v52  ;;  %3005 = vmatprep.subr.mxu0 %v3234_v0  ;;  %v3691_v36 = vld [vmem:[%s3913_s2 + $0x10] sm:$0xff]  ;;  %v3790_v51 = vld [vmem:[%s3915_s4 + $0x18] sm:$0xff] }
 0xdb9   :  { %2993 = vmatpush3.msra.mxu1 %v3681_v53  ;;  %3000 = vmatprep.mubr.msk.f32.mxu1 %vm3235_vm0, %v3234_v0  ;;  %v3798_v52 = vld [vmem:[%s3915_s4 + $0x10] sm:$0xff] }
 0xdba   :  { %2994 = vmatprep.subr.mxu1 %v3234_v0  ;;  %3006 = vmatpush3.msra.mxu0 %v3391_v39 }
 0xdbb   :  { %2995 = vmatpush3.msra.mxu1 %v3691_v36  ;;  %v1431_v54 = vld [vmem:[#allocation5] sm:$0xff]  ;;  %3007 = vmatprep.subr.mxu0 %v3234_v0 }
 0xdbc   :  { %2996 = vmatprep.subr.mxu1 %v3234_v0  ;;  %1689 = vrot.lane.b32.xlu0 %v1431_v54, %s3237_s29  ;;  %v3805_v54 = vld [vmem:[%s3915_s4 + $0x8] sm:$0xff] }
 0xdbd   :  { %2997 = vmatpush3.msra.mxu1 %v3700_v55  ;;  %3008 = vmatpush3.msra.mxu0 %v3402_v42  ;;  %v1728_v39 = vld [vmem:[#allocation2] sm:$0xff] }
 0xdbe   :  { %2998 = vmatprep.subr.mxu1 %v3234_v0  ;;  %3009 = vmatprep.subr.mxu0 %v3234_v0 }
 0xdbf   :  { %2999 = vmatpush3.msra.mxu1 %v3331_v9  ;;  %v1729_v63 = vld [vmem:[#allocation3] sm:$0xff]  ;;  %3010 = vmatpush3.msra.mxu0 %v3416_v45 }
 0xdc0   :  { %3001 = vmatmul.mubr.msk.f32.vlgmr.msra.gmra.mxu1 %vm44_vm1, %v1728_v39  ;;  %1814 = vrot.lane.b32.xlu0 %v1729_v63, %s3237_s29  ;;  %v3812_v39 = vld [vmem:[%s3915_s4] sm:$0xff] }
 0xdc1   :  { %3014 = vmatprep.subr.mxu1 %v3234_v0  ;;  %3022 = vmatprep.mubr.msk.f32.mxu1 %vm3235_vm0, %v3234_v0 }
 0xdc2   :  { %3015 = vmatpush3.msra.mxu1 %v3359_v31  ;;  %3025 = vmatprep.subr.mxu0 %v3234_v0 }
 0xdc3   :  { %3016 = vmatprep.subr.mxu1 %v3234_v0 }
 0xdc4   :  { %3017 = vmatpush3.msra.mxu1 %v3372_v34  ;;  %v3726_v34 = vld [vmem:[%s3914_s3] ss:$0 sm:$0xff] }
 0xdc5   :  { %3018 = vmatprep.subr.mxu1 %v3234_v0 }
 0xdc6   :  { %3019 = vmatpush3.msra.mxu1 %v3384_v37  ;;  %v189_v37 = vadd.f32 %v3726_v34, %v3470_v58 }
 0xdc7   :  { %3020 = vmatprep.subr.mxu1 %v3234_v0 }
 0xdc8   :  { %3021 = vmatpush3.msra.mxu1 %v3407_v43 }
 0xdc9   :  { %3036 = vmatprep.subr.mxu1 %v3234_v0 }
 0xe2e   :  { %v1690_v21 = vpop.permute.xlu0 %1689 }
 0xe32   :  { %v1815_v24 = vpop.permute.xlu0 %1814 }
 0xe76   :  { %v1678_v9 = vpop.f32.mrf.mxu0 }
 0xe78   :  { %v2991_v42 = vpop.f32.mrf.mxu0  ;;  %v1603_v45 = vpop.f32.mrf.mxu1 }
 0xe79   :  { %v1679_v31 = vadd.f32 %v1678_v9, %v1603_v45 }
 0xe7a   :  { %v2980_v1 = vpop.f32.mrf.mxu1 }
 0xe7b   :  { %v1682_v3 = vadd.f32 %v3481_v62, %v1679_v31 }
 0xe7d   :  { %3153 = vtanh.f32 %v1682_v3  ;;  %v1683_v6 = vmul.f32 0.5, %v1682_v3  ;;  %v194_v3 = vadd.f32 %v3726_v34, %v3476_v61 }
 0xe80   :  { %v1803_v2 = vpop.f32.mrf.mxu1 }
 0xe81   :  { %v1807_v43 = vadd.f32 %v1803_v2, %v189_v37 }
 0xe82   :  { %v3002_v4 = vpop.f32.mrf.mxu1 }
 0xe83   :  { %3155 = vtanh.f32 %v1807_v43  ;;  %v1808_v8 = vmul.f32 0.5, %v1807_v43 }
 0xe84   :  { %3157 = vtanh.f32 %v1683_v6 }
 0xe85   :  { %3159 = vtanh.f32 %v1808_v8 }
 0xe8a   :  { %v3154_v7 = vpop.eup %3153 }
 0xe8b   :  { %1694 = vrot.lane.b32.xlu1 %v3154_v7, %s3236_s28 }
 0xe90   :  { %v3156_v5 = vpop.eup %3155 }
 0xe91   :  { %1819 = vrot.lane.b32.xlu1 %v3156_v5, %s3236_s28  ;;  %v3158_v10 = vpop.eup %3157 }
 0xe92   :  { %v1685_v11 = vmul.f32 0.5, %v3158_v10  ;;  %v3160_v13 = vpop.eup %3159 }
 0xe93   :  { %v1810_v17 = vmul.f32 0.5, %v3160_v13 }
 0xe94   :  { %v1686_v15 = vadd.f32 0.5, %v1685_v11 }
 0xe95   :  { %v1811_v18 = vadd.f32 0.5, %v1810_v17 }
 0xe96   :  { %v1692_v22 = vmul.f32 %v1690_v21, %v1686_v15 }
 0xe97   :  { %v1817_v14 = vmul.f32 %v1815_v24, %v1811_v18 }
 0xefd   :  { %v1695_v16 = vpop.permute.xlu1 %1694 }
 0xefe   :  { %v1697_v58 = vmul.f32 %v1695_v16, %v1686_v15 }
 0xf00   :  { %1699 = vrot.lane.b32.xlu1 %v1697_v58, %s3237_s29 }
 0xf03   :  { %v1820_v19 = vpop.permute.xlu1 %1819 }
 0xf04   :  { %v1822_v20 = vmul.f32 %v1820_v19, %v1811_v18 }
 0xf06   :  { %1824 = vrot.lane.b32.xlu1 %v1822_v20, %s3237_s29 }
 0xf72   :  { %v1700_v12 = vpop.permute.xlu1 %1699 }
 0xf73   :  { %v1702_v23 = vadd.f32 %v1700_v12, %v1692_v22 }
 0xf75   :  { %3161 = vtanh.f32 %v1702_v23 }
 0xf78   :  { %v1825_v59 = vpop.permute.xlu1 %1824 }
 0xf79   :  { %v1827_v57 = vadd.f32 %v1825_v59, %v1817_v14 }
 0xf7b   :  { %3163 = vtanh.f32 %v1827_v57 }
 0xf82   :  { %v3162_v25 = vpop.eup %3161 }
 0xf83   :  { %1705 = vrot.lane.b32.xlu0 %v3162_v25, %s3236_s28 }
 0xf88   :  { %v3164_v56 = vpop.eup %3163 }
 0xf89   :  { %1830 = vrot.lane.b32.xlu1 %v3164_v56, %s3236_s28 }
 0xff5   :  { %v1706_v26 = vpop.permute.xlu0 %1705 }
 0xff6   :  { %v1708_v27 = vmul.f32 %v1706_v26, %v1686_v15 }
 0xff8   :  { %1717 = vrot.lane.b32.xlu0 %v1708_v27, %s3237_s29 }
 0xffb   :  { %v1831_v28 = vpop.permute.xlu1 %1830 }
 0xffc   :  { %v1833_v29 = vmul.f32 %v1831_v28, %v1811_v18  ;;  %1722 = vrot.lane.b32.xlu0 %v1702_v23, %s3238_s0 }
 0xffe   :  { %1908 = vrot.lane.b32.xlu1 %v1833_v29, %s3237_s29 }
0x1000   :  { %2012 = vrot.lane.b32.xlu0 %v1827_v57, %s3238_s0 }
0x106a   :  { %v1718_v30 = vpop.permute.xlu0 %1717 }
0x106b   :  { %1720 = vst.msk [vmem:[#allocation4] sm:$0xff] %vm44_vm1, %v1718_v30  ;;  %2662 = vst.msk [vmem:[%s3918_s7 + $0x20] sm:$0xff] %vm44_vm1, %v1718_v30 }
0x106e   :  { %v1723_v32 = vpop.permute.xlu0 %1722 }
0x106f   :  { %1725 = vst.msk [vmem:[#allocation5] sm:$0xff] %vm44_vm1, %v1723_v32 }
0x1070   :  { %v1909_v33 = vpop.permute.xlu1 %1908 }
0x1071   :  { %2010 = vst.msk [vmem:[#allocation2] sm:$0xff] %vm44_vm1, %v1909_v33  ;;  %3023 = vmatmul.mubr.msk.f32.vlgmr.msra.gmra.mxu1 %vm44_vm1, %v1909_v33 }
0x1072   :  { %v2013_v35 = vpop.permute.xlu0 %2012  ;;  %v1730_v38 = vld [vmem:[#allocation4] sm:$0xff]  ;;  %3037 = vmatpush3.msra.mxu1 %v3748_v40  ;;  %3044 = vmatprep.mubr.msk.f32.mxu1 %vm3235_vm0, %v3234_v0 }
0x1073   :  { %2015 = vst.msk [vmem:[#allocation3] sm:$0xff] %vm44_vm1, %v2013_v35  ;;  %3012 = vmatmul.mubr.msk.f32.vlgmr.msra.gmra.mxu0 %vm44_vm1, %v1730_v38  ;;  %3038 = vmatprep.subr.mxu1 %v3234_v0 }
0x1074   :  { %3026 = vmatpush3.msra.mxu0 %v3681_v53  ;;  %3033 = vmatprep.mubr.msk.f32.mxu0 %vm3235_vm0, %v3234_v0 }
0x1075   :  { %3027 = vmatprep.subr.mxu0 %v3234_v0  ;;  %3039 = vmatpush3.msra.mxu1 %v3760_v41 }
0x1076   :  { %3028 = vmatpush3.msra.mxu0 %v3691_v36  ;;  %v1731_v44 = vld [vmem:[#allocation5] sm:$0xff]  ;;  %3040 = vmatprep.subr.mxu1 %v3234_v0 }
0x1077   :  { %3029 = vmatprep.subr.mxu0 %v3234_v0  ;;  %1989 = vrot.lane.b32.xlu0 %v1731_v44, %s3237_s29  ;;  %v3873_v44 = vld [vmem:[%s3917_s6] ss:$0 sm:$0xff] }
0x1078   :  { %3030 = vmatpush3.msra.mxu0 %v3700_v55  ;;  %3041 = vmatpush3.msra.mxu1 %v3768_v46  ;;  %v2028_v48 = vld [vmem:[#allocation2] sm:$0xff] }
0x1079   :  { %3031 = vmatprep.subr.mxu0 %v3234_v0  ;;  %3042 = vmatprep.subr.mxu1 %v3234_v0 }
0x107a   :  { %3032 = vmatpush3.msra.mxu0 %v3776_v47  ;;  %v2029_v49 = vld [vmem:[#allocation3] sm:$0xff]  ;;  %3043 = vmatpush3.msra.mxu1 %v3779_v50 }
0x107b   :  { %3034 = vmatmul.mubr.msk.f32.vlgmr.msra.gmra.mxu0 %vm44_vm1, %v2028_v48  ;;  %2114 = vrot.lane.b32.xlu0 %v2029_v49, %s3237_s29 }
0x107c   :  { %3047 = vmatprep.subr.mxu0 %v3234_v0  ;;  %3055 = vmatprep.mubr.msk.f32.mxu0 %vm3235_vm0, %v3234_v0 }
0x107d   :  { %3048 = vmatpush3.msra.mxu0 %v3790_v51  ;;  %3058 = vmatprep.subr.mxu1 %v3234_v0 }
0x107e   :  { %3049 = vmatprep.subr.mxu0 %v3234_v0 }
0x107f   :  { %3050 = vmatpush3.msra.mxu0 %v3798_v52 }
0x1080   :  { %3051 = vmatprep.subr.mxu0 %v3234_v0 }
0x1081   :  { %3052 = vmatpush3.msra.mxu0 %v3805_v54 }
0x1082   :  { %3053 = vmatprep.subr.mxu0 %v3234_v0 }
0x1083   :  { %3054 = vmatpush3.msra.mxu0 %v3812_v39 }
0x1084   :  { %3069 = vmatprep.subr.mxu0 %v3234_v0 }
0x10e9   :  { %v1990_v18 = vpop.permute.xlu0 %1989 }
0x10ed   :  { %v2115_v22 = vpop.permute.xlu0 %2114 }
0x1131   :  { %v1978_v63 = vpop.f32.mrf.mxu1 }
0x1133   :  { %v3024_v9 = vpop.f32.mrf.mxu1  ;;  %v1903_v42 = vpop.f32.mrf.mxu0 }
0x1134   :  { %v1979_v45 = vadd.f32 %v1978_v63, %v1903_v42 }
0x1135   :  { %v3013_v31 = vpop.f32.mrf.mxu0 }
0x1136   :  { %v1982_v1 = vadd.f32 %v3481_v62, %v1979_v45 }
0x1138   :  { %3165 = vtanh.f32 %v1982_v1  ;;  %v1983_v5 = vmul.f32 0.5, %v1982_v1 }
0x113b   :  { %v2103_v37 = vpop.f32.mrf.mxu0 }
0x113c   :  { %v2107_v2 = vadd.f32 %v2103_v37, %v194_v3 }
0x113d   :  { %v3035_v43 = vpop.f32.mrf.mxu0 }
0x113e   :  { %3167 = vtanh.f32 %v2107_v2  ;;  %v2108_v6 = vmul.f32 0.5, %v2107_v2 }
0x113f   :  { %3169 = vtanh.f32 %v1983_v5 }
0x1140   :  { %3171 = vtanh.f32 %v2108_v6 }
0x1145   :  { %v3166_v4 = vpop.eup %3165 }
0x1146   :  { %1994 = vrot.lane.b32.xlu1 %v3166_v4, %s3236_s28 }
0x114b   :  { %v3168_v7 = vpop.eup %3167 }
0x114c   :  { %2119 = vrot.lane.b32.xlu1 %v3168_v7, %s3236_s28  ;;  %v3170_v8 = vpop.eup %3169 }
0x114d   :  { %v1985_v62 = vmul.f32 0.5, %v3170_v8  ;;  %v3172_v10 = vpop.eup %3171 }
0x114e   :  { %v2110_v15 = vmul.f32 0.5, %v3172_v10 }
0x114f   :  { %v1986_v11 = vadd.f32 0.5, %v1985_v62 }
0x1150   :  { %v2111_v16 = vadd.f32 0.5, %v2110_v15 }
0x1151   :  { %v1992_v19 = vmul.f32 %v1990_v18, %v1986_v11 }
0x1152   :  { %v2117_v12 = vmul.f32 %v2115_v22, %v2111_v16 }
0x11b8   :  { %v1995_v13 = vpop.permute.xlu1 %1994 }
0x11b9   :  { %v1997_v61 = vmul.f32 %v1995_v13, %v1986_v11 }
0x11bb   :  { %1999 = vrot.lane.b32.xlu1 %v1997_v61, %s3237_s29 }
0x11be   :  { %v2120_v58 = vpop.permute.xlu1 %2119 }
0x11bf   :  { %v2122_v17 = vmul.f32 %v2120_v58, %v2111_v16 }
0x11c1   :  { %2124 = vrot.lane.b32.xlu1 %v2122_v17, %s3237_s29 }
0x122d   :  { %v2000_v20 = vpop.permute.xlu1 %1999 }
0x122e   :  { %v2002_v21 = vadd.f32 %v2000_v20, %v1992_v19 }
0x1230   :  { %3173 = vtanh.f32 %v2002_v21 }
0x1233   :  { %v2125_v23 = vpop.permute.xlu1 %2124 }
0x1234   :  { %v2127_v24 = vadd.f32 %v2125_v23, %v2117_v12 }
0x1236   :  { %3175 = vtanh.f32 %v2127_v24 }
0x123d   :  { %v3174_v14 = vpop.eup %3173 }
0x123e   :  { %2005 = vrot.lane.b32.xlu0 %v3174_v14, %s3236_s28 }
0x1243   :  { %v3176_v59 = vpop.eup %3175 }
0x1244   :  { %2130 = vrot.lane.b32.xlu1 %v3176_v59, %s3236_s28 }
0x12b0   :  { %v2006_v57 = vpop.permute.xlu0 %2005 }
0x12b1   :  { %v2008_v25 = vmul.f32 %v2006_v57, %v1986_v11 }
0x12b3   :  { %2017 = vrot.lane.b32.xlu0 %v2008_v25, %s3237_s29 }
0x12b6   :  { %v2131_v56 = vpop.permute.xlu1 %2130 }
0x12b7   :  { %v2133_v26 = vmul.f32 %v2131_v56, %v2111_v16  ;;  %2022 = vrot.lane.b32.xlu0 %v2002_v21, %s3238_s0 }
0x12b9   :  { %2208 = vrot.lane.b32.xlu1 %v2133_v26, %s3237_s29 }
0x12bb   :  { %2312 = vrot.lane.b32.xlu0 %v2127_v24, %s3238_s0 }
0x1325   :  { %v2018_v27 = vpop.permute.xlu0 %2017 }
0x1326   :  { %2020 = vst.msk [vmem:[#allocation4] sm:$0xff] %vm44_vm1, %v2018_v27  ;;  %2666 = vst.msk [vmem:[%s3918_s7 + $0x28] sm:$0xff] %vm44_vm1, %v2018_v27 }
0x1329   :  { %v2023_v28 = vpop.permute.xlu0 %2022 }
0x132a   :  { %2025 = vst.msk [vmem:[#allocation5] sm:$0xff] %vm44_vm1, %v2023_v28 }
0x132b   :  { %v2209_v29 = vpop.permute.xlu1 %2208 }
0x132c   :  { %2310 = vst.msk [vmem:[#allocation2] sm:$0xff] %vm44_vm1, %v2209_v29  ;;  %3056 = vmatmul.mubr.msk.f32.vlgmr.msra.gmra.mxu0 %vm44_vm1, %v2209_v29 }
0x132d   :  { %v2313_v30 = vpop.permute.xlu0 %2312  ;;  %v2030_v32 = vld [vmem:[#allocation4] sm:$0xff]  ;;  %3070 = vmatpush3.msra.mxu0 %v3748_v40  ;;  %3077 = vmatprep.mubr.msk.f32.mxu0 %vm3235_vm0, %v3234_v0 }
0x132e   :  { %2315 = vst.msk [vmem:[#allocation3] sm:$0xff] %vm44_vm1, %v2313_v30  ;;  %3045 = vmatmul.mubr.msk.f32.vlgmr.msra.gmra.mxu1 %vm44_vm1, %v2030_v32  ;;  %3071 = vmatprep.subr.mxu0 %v3234_v0 }
0x132f   :  { %3059 = vmatpush3.msra.mxu1 %v3681_v53  ;;  %3066 = vmatprep.mubr.msk.f32.mxu1 %vm3235_vm0, %v3234_v0 }
0x1330   :  { %3060 = vmatprep.subr.mxu1 %v3234_v0  ;;  %3072 = vmatpush3.msra.mxu0 %v3760_v41 }
0x1331   :  { %3061 = vmatpush3.msra.mxu1 %v3691_v36  ;;  %v2031_v33 = vld [vmem:[#allocation5] sm:$0xff]  ;;  %3073 = vmatprep.subr.mxu0 %v3234_v0 }
0x1332   :  { %3062 = vmatprep.subr.mxu1 %v3234_v0  ;;  %2289 = vrot.lane.b32.xlu0 %v2031_v33, %s3237_s29 }
0x1333   :  { %3063 = vmatpush3.msra.mxu1 %v3700_v55  ;;  %3074 = vmatpush3.msra.mxu0 %v3768_v46  ;;  %v2328_v53 = vld [vmem:[#allocation2] sm:$0xff] }
0x1334   :  { %3064 = vmatprep.subr.mxu1 %v3234_v0  ;;  %3075 = vmatprep.subr.mxu0 %v3234_v0 }
0x1335   :  { %3065 = vmatpush3.msra.mxu1 %v3776_v47  ;;  %v2329_v35 = vld [vmem:[#allocation3] sm:$0xff]  ;;  %3076 = vmatpush3.msra.mxu0 %v3779_v50  ;;  %v199_v47 = vadd.f32 %v3726_v34, %v3474_v60 }
0x1336   :  { %3067 = vmatmul.mubr.msk.f32.vlgmr.msra.gmra.mxu1 %vm44_vm1, %v2328_v53  ;;  %2414 = vrot.lane.b32.xlu0 %v2329_v35, %s3237_s29 }
0x1337   :  { %3080 = vmatprep.subr.mxu1 %v3234_v0  ;;  %3088 = vmatprep.mubr.msk.f32.mxu1 %vm3235_vm0, %v3234_v0 }
0x1338   :  { %3081 = vmatpush3.msra.mxu1 %v3790_v51 }
0x1339   :  { %3082 = vmatprep.subr.mxu1 %v3234_v0 }
0x133a   :  { %3083 = vmatpush3.msra.mxu1 %v3798_v52 }
0x133b   :  { %3084 = vmatprep.subr.mxu1 %v3234_v0 }
0x133c   :  { %3085 = vmatpush3.msra.mxu1 %v3805_v54 }
0x133d   :  { %3086 = vmatprep.subr.mxu1 %v3234_v0 }
0x133e   :  { %3087 = vmatpush3.msra.mxu1 %v3812_v39 }
0x13a4   :  { %v2290_v37 = vpop.permute.xlu0 %2289 }
0x13a8   :  { %v2415_v7 = vpop.permute.xlu0 %2414 }
0x13ec   :  { %v2278_v36 = vpop.f32.mrf.mxu0 }
0x13ee   :  { %v3057_v55 = vpop.f32.mrf.mxu0  ;;  %v2203_v38 = vpop.f32.mrf.mxu1 }
0x13ef   :  { %v2279_v40 = vadd.f32 %v2278_v36, %v2203_v38 }
0x13f0   :  { %v3046_v41 = vpop.f32.mrf.mxu1 }
0x13f1   :  { %v2282_v46 = vadd.f32 %v3873_v44, %v2279_v40 }
0x13f3   :  { %3177 = vtanh.f32 %v2282_v46  ;;  %v2283_v52 = vmul.f32 0.5, %v2282_v46 }
0x13f6   :  { %v2403_v48 = vpop.f32.mrf.mxu1 }
0x13f7   :  { %v2407_v0 = vadd.f32 %v2403_v48, %v199_v47 }
0x13f8   :  { %v3068_v49 = vpop.f32.mrf.mxu1 }
0x13f9   :  { %3179 = vtanh.f32 %v2407_v0  ;;  %v2408_v54 = vmul.f32 0.5, %v2407_v0 }
0x13fa   :  { %3181 = vtanh.f32 %v2283_v52 }
0x13fb   :  { %3183 = vtanh.f32 %v2408_v54 }
0x1400   :  { %v3178_v50 = vpop.eup %3177 }
0x1401   :  { %2294 = vrot.lane.b32.xlu1 %v3178_v50, %s3236_s28 }
0x1406   :  { %v3180_v51 = vpop.eup %3179 }
0x1407   :  { %2419 = vrot.lane.b32.xlu1 %v3180_v51, %s3236_s28  ;;  %v3182_v39 = vpop.eup %3181 }
0x1408   :  { %v2285_v63 = vmul.f32 0.5, %v3182_v39  ;;  %v3184_v9 = vpop.eup %3183 }
0x1409   :  { %v2410_v34 = vmul.f32 0.5, %v3184_v9 }
0x140a   :  { %v2286_v42 = vadd.f32 0.5, %v2285_v63 }
0x140b   :  { %v2411_v31 = vadd.f32 0.5, %v2410_v34 }
0x140c   :  { %v2292_v2 = vmul.f32 %v2290_v37, %v2286_v42 }
0x140d   :  { %v2417_v5 = vmul.f32 %v2415_v7, %v2411_v31 }
0x1473   :  { %v2295_v45 = vpop.permute.xlu1 %2294 }
0x1474   :  { %v2297_v60 = vmul.f32 %v2295_v45, %v2286_v42 }
0x1476   :  { %2299 = vrot.lane.b32.xlu1 %v2297_v60, %s3237_s29 }
0x1479   :  { %v2420_v1 = vpop.permute.xlu1 %2419 }
0x147a   :  { %v2422_v3 = vmul.f32 %v2420_v1, %v2411_v31 }
0x147c   :  { %2424 = vrot.lane.b32.xlu1 %v2422_v3, %s3237_s29 }
0x14e8   :  { %v2300_v43 = vpop.permute.xlu1 %2299 }
0x14e9   :  { %v2302_v4 = vadd.f32 %v2300_v43, %v2292_v2 }
0x14eb   :  { %3185 = vtanh.f32 %v2302_v4 }
0x14ee   :  { %v2425_v6 = vpop.permute.xlu1 %2424 }
0x14ef   :  { %v2427_v8 = vadd.f32 %v2425_v6, %v2417_v5 }
0x14f1   :  { %3187 = vtanh.f32 %v2427_v8 }
0x14f8   :  { %v3186_v62 = vpop.eup %3185 }
0x14f9   :  { %2305 = vrot.lane.b32.xlu0 %v3186_v62, %s3236_s28 }
0x14fe   :  { %v3188_v10 = vpop.eup %3187 }
0x14ff   :  { %2430 = vrot.lane.b32.xlu1 %v3188_v10, %s3236_s28 }
0x156b   :  { %v2306_v11 = vpop.permute.xlu0 %2305 }
0x156c   :  { %v2308_v13 = vmul.f32 %v2306_v11, %v2286_v42 }
0x156e   :  { %2317 = vrot.lane.b32.xlu0 %v2308_v13, %s3237_s29 }
0x1571   :  { %v2431_v61 = vpop.permute.xlu1 %2430 }
0x1572   :  { %v2433_v15 = vmul.f32 %v2431_v61, %v2411_v31  ;;  %2322 = vrot.lane.b32.xlu0 %v2302_v4, %s3238_s0 }
0x1574   :  { %2508 = vrot.lane.b32.xlu1 %v2433_v15, %s3237_s29 }
0x15e0   :  { %v2318_v16 = vpop.permute.xlu0 %2317 }
0x15e1   :  { %2320 = vst.msk [vmem:[#allocation4] sm:$0xff] %vm44_vm1, %v2318_v16  ;;  %2670 = vst.msk [vmem:[%s3918_s7 + $0x30] sm:$0xff] %vm44_vm1, %v2318_v16 }
0x15e4   :  { %v2323_v58 = vpop.permute.xlu0 %2322 }
0x15e5   :  { %2325 = vst.msk [vmem:[#allocation5] sm:$0xff] %vm44_vm1, %v2323_v58 }
0x15e6   :  { %v2509_v17 = vpop.permute.xlu1 %2508 }
0x15e7   :  { %2610 = vst.msk [vmem:[#allocation2] sm:$0xff] %vm44_vm1, %v2509_v17  ;;  %3089 = vmatmul.mubr.msk.f32.vlgmr.msra.gmra.mxu1 %vm44_vm1, %v2509_v17 }
0x15e8   :  { %v2330_v18 = vld [vmem:[#allocation4] sm:$0xff] }
0x15e9   :  { %3078 = vmatmul.mubr.msk.f32.vlgmr.msra.gmra.mxu0 %vm44_vm1, %v2330_v18 }
0x15ec   :  { %v2331_v19 = vld [vmem:[#allocation5] sm:$0xff] }
0x15ed   :  { %2589 = vrot.lane.b32.xlu0 %v2331_v19, %s3237_s29 }
0x165f   :  { %v2590_v28 = vpop.permute.xlu0 %2589 }
0x16a7   :  { %v2578_v20 = vpop.f32.mrf.mxu1 }
0x16a9   :  { %v3090_v21 = vpop.f32.mrf.mxu1  ;;  %v2503_v22 = vpop.f32.mrf.mxu0 }
0x16aa   :  { %v2579_v12 = vadd.f32 %v2578_v20, %v2503_v22 }
0x16ab   :  { %v3079_v23 = vpop.f32.mrf.mxu0 }
0x16ac   :  { %v2582_v24 = vadd.f32 %v3873_v44, %v2579_v12 }
0x16ae   :  { %3189 = vtanh.f32 %v2582_v24  ;;  %v2583_v59 = vmul.f32 0.5, %v2582_v24 }
0x16b0   :  { %3191 = vtanh.f32 %v2583_v59 }
0x16bb   :  { %v3190_v14 = vpop.eup %3189 }
0x16bc   :  { %2594 = vrot.lane.b32.xlu1 %v3190_v14, %s3236_s28 }
0x16bd   :  { %v3192_v57 = vpop.eup %3191 }
0x16be   :  { %v2585_v25 = vmul.f32 0.5, %v3192_v57 }
0x16c0   :  { %v2586_v56 = vadd.f32 0.5, %v2585_v25 }
0x16c2   :  { %v2592_v29 = vmul.f32 %v2590_v28, %v2586_v56 }
0x172e   :  { %v2595_v26 = vpop.permute.xlu1 %2594 }
0x172f   :  { %v2597_v27 = vmul.f32 %v2595_v26, %v2586_v56 }
0x1731   :  { %2599 = vrot.lane.b32.xlu1 %v2597_v27, %s3237_s29 }
0x1735   :  { %2612 = vrot.lane.b32.xlu1 %v2427_v8, %s3238_s0 }
0x17a3   :  { %v2600_v30 = vpop.permute.xlu1 %2599 }
0x17a4   :  { %v2602_v32 = vadd.f32 %v2600_v30, %v2592_v29 }
0x17a6   :  { %3193 = vtanh.f32 %v2602_v32  ;;  %2622 = vrot.lane.b32.xlu1 %v2602_v32, %s3238_s0 }
0x17a7   :  { %v2613_v33 = vpop.permute.xlu1 %2612 }
0x17a8   :  { %2615 = vst.msk [vmem:[#allocation3] sm:$0xff] %vm44_vm1, %v2613_v33 }
0x17b3   :  { %v3194_v53 = vpop.eup %3193 }
0x17b4   :  { %2605 = vrot.lane.b32.xlu0 %v3194_v53, %s3236_s28 }
0x1818   :  { %v2623_v35 = vpop.permute.xlu1 %2622 }
0x1819   :  { %2625 = vst.msk [vmem:[#allocation5] sm:$0xff] %vm44_vm1, %v2623_v35 }
0x1826   :  { %v2606_v36 = vpop.permute.xlu0 %2605 }
0x1827   :  { %v2608_v55 = vmul.f32 %v2606_v36, %v2586_v56 }
0x1829   :  { %2617 = vrot.lane.b32.xlu0 %v2608_v55, %s3237_s29 }
0x189b   :  { %v2618_v38 = vpop.permute.xlu0 %2617 }
0x189c   :  { %2620 = vst.msk [vmem:[#allocation4] sm:$0xff] %vm44_vm1, %v2618_v38  ;;  %2674 = vst.msk [vmem:[%s3918_s7 + $0x38] sm:$0xff] %vm44_vm1, %v2618_v38 }
0x189d   :  { %2632 = vsyncpa [#allocation8], 1 }

</bundles_post_ra>
